<compile_context>
chip_gen: v5e
topology: v5e:2x2
jax: 0.10.0
libtpu: 0.0.40
codegen_flags: <defaults>
</compile_context>

<pallas_src>
import numpy as np
from math import comb, factorial

import jax
import jax.numpy as jnp
from jax.experimental import pallas as pl
from jax.experimental.pallas import tpu as pltpu

# ----------------------- module hyper-parameters ---------------------------
LMAX = 3
NMAX = 3
RC = 6.0                       # rc of the synthetic cutoff radial
UNIT = RC / 3.0                # RealSeriesSoap default atomic_unit = radial.rc / 3

LP = LMAX + 1                  # lmax + 1
NP = NMAX + 1                  # nmax + 1
L2 = LP * LP


# ----------------------- host-side static constants ------------------------
def soap_constants():
    one = np.ones((LP, LP), np.float32)
    Yr = (2.0 * np.tril(one) - np.eye(LP, dtype=np.float32)).astype(np.float32)
    Yi = (2.0 * np.triu(one, k=1)).astype(np.float32)
    # RealSeriesSoap nnl normalisation
    a = np.array([[1.0 / ((2 * l + 1) * 2 ** (2 * n + l) * factorial(n) * factorial(n + l))
                   for l in range(LP)] for n in range(NP)], dtype=np.float64)
    nnl = np.sqrt(a[None, :, :] * a[:, None, :]).astype(np.float32)      # (NP, NP, LP)
    return Yr, Yi, nnl


def _num_tensorcores():
    # v7x has 2 TensorCores per chip; v5e/v6e (and everything else) get 1.
    try:
        kind = jax.devices()[0].device_kind.lower()
    except Exception:
        return 1
    return 2 if "v7" in kind else 1


# ----------------------- real regular solid harmonics ----------------------
def _ylm_rows(x, y, z, r2):
    """(lmax+1, lmax+1) table of harmonic components with the AbsSeriesSoap
    layout: m=0 on the diagonal, Re(m>0) lower triangle, Im(m>0) upper
    triangle.  Works on arrays of any shape (used by both kernel & reference).
    # TODO(synk): autoforce's Ylm module is not provided; a standard real
    # regular-solid-harmonic convention is used deterministically."""
    A = [jnp.ones_like(x)]
    B = [jnp.zeros_like(x)]
    for m in range(1, LMAX + 1):
        A.append(A[m - 1] * x - B[m - 1] * y)
        B.append(A[m - 1] * y + B[m - 1] * x)
    zpow = [jnp.ones_like(x)]
    for _ in range(LMAX):
        zpow.append(zpow[-1] * z)
    r2pow = [jnp.ones_like(x)]
    for _ in range(LMAX // 2):
        r2pow.append(r2pow[-1] * r2)

    def pi_lm(l, m):
        acc = None
        for k in range((l - m) // 2 + 1):
            g = float(((-1) ** k) * comb(l, k) * comb(2 * l - 2 * k, l)
                      * factorial(l - 2 * k) / (2 ** l * factorial(l - 2 * k - m)))
            term = g * r2pow[k] * zpow[l - 2 * k - m]
            acc = term if acc is None else acc + term
        return acc

    rows = [[None] * LP for _ in range(LP)]
    for l in range(LP):
        rows[l][l] = pi_lm(l, 0)
        for m in range(1, l + 1):
            norm = float((2.0 * factorial(l - m) / factorial(l + m)) ** 0.5)
            plm = pi_lm(l, m)
            rows[l][l - m] = norm * plm * A[m]
            rows[l - m][l] = norm * plm * B[m]
    return rows


# ----------------------- Pallas kernel --------------------------------------
def _soap_kernel(xyz_ref, out_ref):
    # xyz_ref : (3, S, 128)           one atom tile, atoms dense on (sublane, lane)
    # out_ref : (1, NP*L2, 8, 128)    per-core running partial sums of f_n * Y_j
    #                                 (resident across the tile axis; reduced to
    #                                  scalars in the wrapper)
    t = pl.program_id(1)

    @pl.when(t == 0)
    def _init():
        out_ref[...] = jnp.zeros_like(out_ref)

    inv_unit = 1.0 / UNIT
    x = xyz_ref[0] * inv_unit                            # (S, 128)
    y = xyz_ref[1] * inv_unit
    z = xyz_ref[2] * inv_unit
    r2 = x * x + y * y + z * z
    d = jnp.sqrt(r2)

    # RealSeriesSoap radial: exp(-0.5*(x/unit)^2) * cutoff(x) evaluated at x=unit*d
    # TODO(synk): autoforce's radial class is not provided; a quadratic cutoff
    # (1 - x/rc)^2 inside rc is used as a deterministic stand-in (same as the
    # in-file JAX reference).
    xr = UNIT * d
    tc = 1.0 - xr * (1.0 / RC)
    rad = jnp.exp(-0.5 * r2) * jnp.where(xr < RC, tc * tc, 0.0)          # (S, 128)

    # f[n] = rad * d^(2n), built by repeated multiplication by d^2
    h = []
    row = rad
    for _ in range(NP):
        h.append(row)
        row = row * r2

    rows = _ylm_rows(x, y, z, r2)                        # 16 x (S, 128)

    S = x.shape[0]
    nsub = S // 8

    def sub_reduce(v):
        # (S, 128) -> (8, 128): add aligned 8-sublane chunks (pure VPU).
        acc = v[0:8]
        for s in range(1, nsub):
            acc = acc + v[8 * s:8 * (s + 1)]
        return acc

    # c[n, l1*LP + l2] partials: exact f32 multiply/add on the VPU, no MXU.
    k = 0
    for n in range(NP):
        fn = h[n]
        for l1 in range(LP):
            for l2 in range(LP):
                part = sub_reduce(fn * rows[l1][l2])     # (8, 128)
                out_ref[0, k] += part
                k += 1


# ----------------------- wrapper --------------------------------------------
def real_series_soap(coo, tile=8192, num_cores=None):
    """RealSeriesSoap(lmax=3, nmax=3, radial=quadratic cutoff).forward(coo, grad=False)."""
    coo = jnp.asarray(coo, jnp.float32)
    N = coo.shape[0]
    cores = _num_tensorcores() if num_cores is None else int(num_cores)

    # tile = atoms per grid step; multiple of 1024 so the slab is (S, 128) with
    # S a multiple of 8, and no larger than needed for this N.
    tile = max(1024, (int(tile) // 1024) * 1024)
    tile = min(tile, max(1024, -(-N // 1024) * 1024))
    S = tile // 128

    total_tiles = -(-N // tile)
    total_tiles = -(-total_tiles // cores) * cores
    tiles_per_core = total_tiles // cores
    npad = total_tiles * tile

    # pad with atoms far outside the cutoff: their radial weight is exactly 0
    if npad > N:
        pad = jnp.full((npad - N, 3), 4.0 * RC, jnp.float32)
        coo = jnp.concatenate([coo, pad], axis=0)
    # (3, npad//128, 128): atoms dense on (sublane, lane); ~12 B/atom of HBM.
    xyz = coo.T.reshape(3, npad // 128, 128)

    cost = pl.CostEstimate(
        flops=int(npad) * 250,
        transcendentals=2 * int(npad),
        bytes_accessed=int(npad) * 12 + cores * NP * L2 * 8 * 128 * 4)

    out = pl.pallas_call(
        _soap_kernel,
        out_shape=jax.ShapeDtypeStruct((cores, NP * L2, 8, 128), jnp.float32),
        grid_spec=pltpu.PrefetchScalarGridSpec(
            num_scalar_prefetch=0,
            grid=(cores, tiles_per_core),
            in_specs=[
                pl.BlockSpec((3, S, 128),
                             lambda c, t: (0, c * tiles_per_core + t, 0)),
            ],
            out_specs=pl.BlockSpec((1, NP * L2, 8, 128),
                                   lambda c, t: (c, 0, 0, 0)),
        ),
        compiler_params=pltpu.CompilerParams(
            dimension_semantics=("parallel", "arbitrary")),
        cost_estimate=cost,
    )(xyz)

    # tiny epilogue in plain JAX: finish the reduction, Yr/Yi contraction, nnl.
    Yr, Yi, nnl = soap_constants()
    c = jnp.sum(out, axis=(0, 2, 3)).reshape(NP, LP, LP)        # c[n, l1, l2]
    nnp_ = c[None] * c[:, None]                                  # (NP, NP, LP, LP)
    p = (nnp_ * jnp.asarray(Yr)).sum(-1) + (nnp_ * jnp.asarray(Yi)).sum(-2)
    return p * jnp.asarray(nnl)                                  # (NP, NP, LP)


# ----------------------- pure-JAX reference ---------------------------------
def real_series_soap_reference(coo):
    Yr, Yi, nnl = soap_constants()
    xyz = jnp.asarray(coo, jnp.float32) / UNIT
    x, y, z = xyz[:, 0], xyz[:, 1], xyz[:, 2]
    r2 = x * x + y * y + z * z
    d = jnp.sqrt(r2)
    xr = UNIT * d
    tc = 1.0 - xr * (1.0 / RC)
    r = jnp.exp(-0.5 * r2) * jnp.where(xr < RC, tc * tc, 0.0)
    n = 2.0 * jnp.arange(NP, dtype=jnp.float32)
    f = r[None, :] * d[None, :] ** n[:, None]                         # (NP, N)
    rows = _ylm_rows(x, y, z, r2)
    Y = jnp.stack([jnp.stack(row, axis=0) for row in rows], axis=0)   # (LP, LP, N)
    c = jnp.sum(f[:, None, None, :] * Y[None], axis=-1)               # (NP, LP, LP)
    nnp_ = c[None] * c[:, None]
    p = (nnp_ * jnp.asarray(Yr)).sum(-1) + (nnp_ * jnp.asarray(Yi)).sum(-2)
    return p * jnp.asarray(nnl)                                       # (NP, NP, LP)


def _check(a, b, label):
    scale = max(1.0, float(np.max(np.abs(b))))
    if not np.allclose(a, b, rtol=1e-3, atol=1e-3 * scale):
        raise AssertionError(
            "Pallas kernel does not match JAX reference (%s)" % label)


if __name__ == "__main__":
    key = jax.random.PRNGKey(0)
    k1, k2 = jax.random.split(key)

    # small case: 8 atoms (single tile, mostly padded)
    coo = 1.5 * jax.random.normal(k1, (8, 3), dtype=jnp.float32)
    p = jax.block_until_ready(real_series_soap(coo))
    p_ref = np.asarray(real_series_soap_reference(coo))
    assert p.shape == (NP, NP, LP), p.shape
    _check(np.asarray(p), p_ref, "N=8")

    # larger case: multiple atom tiles + padding (exercises the pipelined
    # reduction over the "arbitrary" tile axis and in-place accumulation)
    coo2 = 3.0 * jax.random.normal(k2, (3000, 3), dtype=jnp.float32)
    p2 = jax.block_until_ready(real_series_soap(coo2, tile=1024))
    p2_ref = np.asarray(real_series_soap_reference(coo2))
    _check(np.asarray(p2), p2_ref, "N=3000 tile=1024")

    # same atoms with the default (larger) tile path
    p3 = jax.block_until_ready(real_series_soap(coo2))
    _check(np.asarray(p3), p2_ref, "N=3000 default tile")

    print("KERNEL_OK")
</pallas_src>

<mosaic_0001>
module attributes {stable_mosaic.version = 11 : i64} {
  func.func @_soap_kernel(%arg0: i32, %arg1: i32, %arg2: memref<3x8x128xf32, #tpu.memory_space<vmem>>, %arg3: memref<1x64x8x128xf32, #tpu.memory_space<vmem>>) attributes {dimension_semantics = [#tpu.dimension_semantics<parallel>, #tpu.dimension_semantics<arbitrary>], iteration_bounds = array<i64: 1, 1>, scalar_prefetch = 0 : i64, scratch_operands = 0 : i64, tpu.core_type = #tpu.core_type<tc>, window_params = [{transform_indices = @transform_0, window_bounds = array<i64: 3, 8, 128>}, {transform_indices = @transform_1, window_bounds = array<i64: 1, 64, 8, 128>}]} {
    %c0_i32 = arith.constant 0 : i32
    %0 = arith.cmpi eq, %arg1, %c0_i32 : i32
    %1 = arith.extui %0 : i1 to i32
    %c0_i32_0 = arith.constant 0 : i32
    %2 = arith.cmpi ne, %1, %c0_i32_0 : i32
    scf.if %2 {
      %cst_495 = arith.constant 0.000000e+00 : f32
      %591 = vector.broadcast %cst_495 : f32 to vector<1x64x8x128xf32>
      %c0_496 = arith.constant 0 : index
      %c0_497 = arith.constant 0 : index
      %c0_498 = arith.constant 0 : index
      %c0_499 = arith.constant 0 : index
      %592 = vector.load %arg3[%c0_496, %c0_497, %c0_498, %c0_499] : memref<1x64x8x128xf32, #tpu.memory_space<vmem>>, vector<1x64x8x128xf32>
      tpu.vector_store %arg3[%c0_496, %c0_497, %c0_498, %c0_499], %591 {strides = array<i32>} : memref<1x64x8x128xf32, #tpu.memory_space<vmem>>, vector<1x64x8x128xf32>,
    } else {
    }
    %c0 = arith.constant 0 : index
    %c0_1 = arith.constant 0 : index
    %c0_2 = arith.constant 0 : index
    %3 = vector.load %arg2[%c0, %c0_1, %c0_2] : memref<3x8x128xf32, #tpu.memory_space<vmem>>, vector<1x8x128xf32>
    %4 = vector.shape_cast %3 : vector<1x8x128xf32> to vector<8x128xf32>
    %cst = arith.constant 5.000000e-01 : f32
    %5 = vector.broadcast %cst : f32 to vector<8x128xf32>
    %6 = arith.mulf %4, %5 : vector<8x128xf32>
    %c1 = arith.constant 1 : index
    %c0_3 = arith.constant 0 : index
    %c0_4 = arith.constant 0 : index
    %7 = vector.load %arg2[%c1, %c0_3, %c0_4] : memref<3x8x128xf32, #tpu.memory_space<vmem>>, vector<1x8x128xf32>
    %8 = vector.shape_cast %7 : vector<1x8x128xf32> to vector<8x128xf32>
    %cst_5 = arith.constant 5.000000e-01 : f32
    %9 = vector.broadcast %cst_5 : f32 to vector<8x128xf32>
    %10 = arith.mulf %8, %9 : vector<8x128xf32>
    %c2 = arith.constant 2 : index
    %c0_6 = arith.constant 0 : index
    %c0_7 = arith.constant 0 : index
    %11 = vector.load %arg2[%c2, %c0_6, %c0_7] : memref<3x8x128xf32, #tpu.memory_space<vmem>>, vector<1x8x128xf32>
    %12 = vector.shape_cast %11 : vector<1x8x128xf32> to vector<8x128xf32>
    %cst_8 = arith.constant 5.000000e-01 : f32
    %13 = vector.broadcast %cst_8 : f32 to vector<8x128xf32>
    %14 = arith.mulf %12, %13 : vector<8x128xf32>
    %15 = arith.mulf %6, %6 : vector<8x128xf32>
    %16 = arith.mulf %10, %10 : vector<8x128xf32>
    %17 = arith.addf %15, %16 : vector<8x128xf32>
    %18 = arith.mulf %14, %14 : vector<8x128xf32>
    %19 = arith.addf %17, %18 : vector<8x128xf32>
    %20 = math.sqrt %19 : vector<8x128xf32>
    %cst_9 = arith.constant 2.000000e+00 : f32
    %21 = vector.broadcast %cst_9 : f32 to vector<8x128xf32>
    %22 = arith.mulf %21, %20 : vector<8x128xf32>
    %cst_10 = arith.constant 0.166666672 : f32
    %23 = vector.broadcast %cst_10 : f32 to vector<8x128xf32>
    %24 = arith.mulf %22, %23 : vector<8x128xf32>
    %cst_11 = arith.constant 1.000000e+00 : f32
    %25 = vector.broadcast %cst_11 : f32 to vector<8x128xf32>
    %26 = arith.subf %25, %24 : vector<8x128xf32>
    %cst_12 = arith.constant -5.000000e-01 : f32
    %27 = vector.broadcast %cst_12 : f32 to vector<8x128xf32>
    %28 = arith.mulf %27, %19 : vector<8x128xf32>
    %29 = math.exp %28 : vector<8x128xf32>
    %cst_13 = arith.constant 6.000000e+00 : f32
    %30 = vector.broadcast %cst_13 : f32 to vector<8x128xf32>
    %31 = arith.cmpf olt, %22, %30 : vector<8x128xf32>
    %32 = arith.mulf %26, %26 : vector<8x128xf32>
    %cst_14 = arith.constant 0.000000e+00 : f32
    %33 = vector.broadcast %cst_14 : f32 to vector<8x128xf32>
    %34 = arith.select %31, %32, %33 : vector<8x128xi1>, vector<8x128xf32>
    %35 = arith.mulf %29, %34 : vector<8x128xf32>
    %36 = arith.mulf %35, %19 : vector<8x128xf32>
    %37 = arith.mulf %36, %19 : vector<8x128xf32>
    %38 = arith.mulf %37, %19 : vector<8x128xf32>
    %cst_15 = arith.constant 1.000000e+00 : f32
    %39 = vector.broadcast %cst_15 : f32 to vector<8x128xf32>
    %cst_16 = arith.constant 0.000000e+00 : f32
    %40 = vector.broadcast %cst_16 : f32 to vector<8x128xf32>
    %41 = arith.mulf %39, %6 : vector<8x128xf32>
    %42 = arith.mulf %40, %10 : vector<8x128xf32>
    %43 = arith.subf %41, %42 : vector<8x128xf32>
    %44 = arith.mulf %39, %10 : vector<8x128xf32>
    %45 = arith.mulf %40, %6 : vector<8x128xf32>
    %46 = arith.addf %44, %45 : vector<8x128xf32>
    %47 = arith.mulf %43, %6 : vector<8x128xf32>
    %48 = arith.mulf %46, %10 : vector<8x128xf32>
    %49 = arith.subf %47, %48 : vector<8x128xf32>
    %50 = arith.mulf %43, %10 : vector<8x128xf32>
    %51 = arith.mulf %46, %6 : vector<8x128xf32>
    %52 = arith.addf %50, %51 : vector<8x128xf32>
    %53 = arith.mulf %49, %6 : vector<8x128xf32>
    %54 = arith.mulf %52, %10 : vector<8x128xf32>
    %55 = arith.subf %53, %54 : vector<8x128xf32>
    %56 = arith.mulf %49, %10 : vector<8x128xf32>
    %57 = arith.mulf %52, %6 : vector<8x128xf32>
    %58 = arith.addf %56, %57 : vector<8x128xf32>
    %cst_17 = arith.constant 1.000000e+00 : f32
    %59 = vector.broadcast %cst_17 : f32 to vector<8x128xf32>
    %60 = arith.mulf %59, %14 : vector<8x128xf32>
    %61 = arith.mulf %60, %14 : vector<8x128xf32>
    %62 = arith.mulf %61, %14 : vector<8x128xf32>
    %cst_18 = arith.constant 1.000000e+00 : f32
    %63 = vector.broadcast %cst_18 : f32 to vector<8x128xf32>
    %64 = arith.mulf %63, %19 : vector<8x128xf32>
    %cst_19 = arith.constant 1.000000e+00 : f32
    %65 = vector.broadcast %cst_19 : f32 to vector<8x128xf32>
    %66 = arith.mulf %65, %63 : vector<8x128xf32>
    %67 = arith.mulf %66, %59 : vector<8x128xf32>
    %cst_20 = arith.constant 1.000000e+00 : f32
    %68 = vector.broadcast %cst_20 : f32 to vector<8x128xf32>
    %69 = arith.mulf %68, %63 : vector<8x128xf32>
    %70 = arith.mulf %69, %60 : vector<8x128xf32>
    %cst_21 = arith.constant 1.000000e+00 : f32
    %71 = vector.broadcast %cst_21 : f32 to vector<8x128xf32>
    %72 = arith.mulf %71, %63 : vector<8x128xf32>
    %73 = arith.mulf %72, %59 : vector<8x128xf32>
    %cst_22 = arith.constant 1.000000e+00 : f32
    %74 = vector.broadcast %cst_22 : f32 to vector<8x128xf32>
    %75 = arith.mulf %74, %73 : vector<8x128xf32>
    %76 = arith.mulf %75, %43 : vector<8x128xf32>
    %cst_23 = arith.constant 1.000000e+00 : f32
    %77 = vector.broadcast %cst_23 : f32 to vector<8x128xf32>
    %78 = arith.mulf %77, %73 : vector<8x128xf32>
    %79 = arith.mulf %78, %46 : vector<8x128xf32>
    %cst_24 = arith.constant 1.500000e+00 : f32
    %80 = vector.broadcast %cst_24 : f32 to vector<8x128xf32>
    %81 = arith.mulf %80, %63 : vector<8x128xf32>
    %82 = arith.mulf %81, %61 : vector<8x128xf32>
    %cst_25 = arith.constant -5.000000e-01 : f32
    %83 = vector.broadcast %cst_25 : f32 to vector<8x128xf32>
    %84 = arith.mulf %83, %64 : vector<8x128xf32>
    %85 = arith.mulf %84, %59 : vector<8x128xf32>
    %86 = arith.addf %82, %85 : vector<8x128xf32>
    %cst_26 = arith.constant 3.000000e+00 : f32
    %87 = vector.broadcast %cst_26 : f32 to vector<8x128xf32>
    %88 = arith.mulf %87, %63 : vector<8x128xf32>
    %89 = arith.mulf %88, %60 : vector<8x128xf32>
    %cst_27 = arith.constant 0.577350259 : f32
    %90 = vector.broadcast %cst_27 : f32 to vector<8x128xf32>
    %91 = arith.mulf %90, %89 : vector<8x128xf32>
    %92 = arith.mulf %91, %43 : vector<8x128xf32>
    %cst_28 = arith.constant 0.577350259 : f32
    %93 = vector.broadcast %cst_28 : f32 to vector<8x128xf32>
    %94 = arith.mulf %93, %89 : vector<8x128xf32>
    %95 = arith.mulf %94, %46 : vector<8x128xf32>
    %cst_29 = arith.constant 3.000000e+00 : f32
    %96 = vector.broadcast %cst_29 : f32 to vector<8x128xf32>
    %97 = arith.mulf %96, %63 : vector<8x128xf32>
    %98 = arith.mulf %97, %59 : vector<8x128xf32>
    %cst_30 = arith.constant 0.288675129 : f32
    %99 = vector.broadcast %cst_30 : f32 to vector<8x128xf32>
    %100 = arith.mulf %99, %98 : vector<8x128xf32>
    %101 = arith.mulf %100, %49 : vector<8x128xf32>
    %cst_31 = arith.constant 0.288675129 : f32
    %102 = vector.broadcast %cst_31 : f32 to vector<8x128xf32>
    %103 = arith.mulf %102, %98 : vector<8x128xf32>
    %104 = arith.mulf %103, %52 : vector<8x128xf32>
    %cst_32 = arith.constant 2.500000e+00 : f32
    %105 = vector.broadcast %cst_32 : f32 to vector<8x128xf32>
    %106 = arith.mulf %105, %63 : vector<8x128xf32>
    %107 = arith.mulf %106, %62 : vector<8x128xf32>
    %cst_33 = arith.constant -1.500000e+00 : f32
    %108 = vector.broadcast %cst_33 : f32 to vector<8x128xf32>
    %109 = arith.mulf %108, %64 : vector<8x128xf32>
    %110 = arith.mulf %109, %60 : vector<8x128xf32>
    %111 = arith.addf %107, %110 : vector<8x128xf32>
    %cst_34 = arith.constant 7.500000e+00 : f32
    %112 = vector.broadcast %cst_34 : f32 to vector<8x128xf32>
    %113 = arith.mulf %112, %63 : vector<8x128xf32>
    %114 = arith.mulf %113, %61 : vector<8x128xf32>
    %cst_35 = arith.constant -1.500000e+00 : f32
    %115 = vector.broadcast %cst_35 : f32 to vector<8x128xf32>
    %116 = arith.mulf %115, %64 : vector<8x128xf32>
    %117 = arith.mulf %116, %59 : vector<8x128xf32>
    %118 = arith.addf %114, %117 : vector<8x128xf32>
    %cst_36 = arith.constant 0.408248305 : f32
    %119 = vector.broadcast %cst_36 : f32 to vector<8x128xf32>
    %120 = arith.mulf %119, %118 : vector<8x128xf32>
    %121 = arith.mulf %120, %43 : vector<8x128xf32>
    %cst_37 = arith.constant 0.408248305 : f32
    %122 = vector.broadcast %cst_37 : f32 to vector<8x128xf32>
    %123 = arith.mulf %122, %118 : vector<8x128xf32>
    %124 = arith.mulf %123, %46 : vector<8x128xf32>
    %cst_38 = arith.constant 1.500000e+01 : f32
    %125 = vector.broadcast %cst_38 : f32 to vector<8x128xf32>
    %126 = arith.mulf %125, %63 : vector<8x128xf32>
    %127 = arith.mulf %126, %60 : vector<8x128xf32>
    %cst_39 = arith.constant 0.129099444 : f32
    %128 = vector.broadcast %cst_39 : f32 to vector<8x128xf32>
    %129 = arith.mulf %128, %127 : vector<8x128xf32>
    %130 = arith.mulf %129, %49 : vector<8x128xf32>
    %cst_40 = arith.constant 0.129099444 : f32
    %131 = vector.broadcast %cst_40 : f32 to vector<8x128xf32>
    %132 = arith.mulf %131, %127 : vector<8x128xf32>
    %133 = arith.mulf %132, %52 : vector<8x128xf32>
    %cst_41 = arith.constant 1.500000e+01 : f32
    %134 = vector.broadcast %cst_41 : f32 to vector<8x128xf32>
    %135 = arith.mulf %134, %63 : vector<8x128xf32>
    %136 = arith.mulf %135, %59 : vector<8x128xf32>
    %cst_42 = arith.constant 0.0527046286 : f32
    %137 = vector.broadcast %cst_42 : f32 to vector<8x128xf32>
    %138 = arith.mulf %137, %136 : vector<8x128xf32>
    %139 = arith.mulf %138, %55 : vector<8x128xf32>
    %cst_43 = arith.constant 0.0527046286 : f32
    %140 = vector.broadcast %cst_43 : f32 to vector<8x128xf32>
    %141 = arith.mulf %140, %136 : vector<8x128xf32>
    %142 = arith.mulf %141, %58 : vector<8x128xf32>
    %143 = arith.mulf %35, %67 : vector<8x128xf32>
    %c0_44 = arith.constant 0 : index
    %c0_45 = arith.constant 0 : index
    %c0_46 = arith.constant 0 : index
    %c0_47 = arith.constant 0 : index
    %144 = vector.load %arg3[%c0_44, %c0_45, %c0_46, %c0_47] : memref<1x64x8x128xf32, #tpu.memory_space<vmem>>, vector<1x1x8x128xf32>
    %145 = vector.shape_cast %144 : vector<1x1x8x128xf32> to vector<8x128xf32>
    %146 = arith.addf %145, %143 : vector<8x128xf32>
    %c0_48 = arith.constant 0 : index
    %c0_49 = arith.constant 0 : index
    %c0_50 = arith.constant 0 : index
    %c0_51 = arith.constant 0 : index
    %147 = vector.load %arg3[%c0_48, %c0_49, %c0_50, %c0_51] : memref<1x64x8x128xf32, #tpu.memory_space<vmem>>, vector<1x1x8x128xf32>
    %148 = vector.shape_cast %147 : vector<1x1x8x128xf32> to vector<8x128xf32>
    %149 = vector.shape_cast %146 : vector<8x128xf32> to vector<1x1x8x128xf32>
    tpu.vector_store %arg3[%c0_48, %c0_49, %c0_50, %c0_51], %149 {strides = array<i32>} : memref<1x64x8x128xf32, #tpu.memory_space<vmem>>, vector<1x1x8x128xf32>,
    %150 = arith.mulf %35, %79 : vector<8x128xf32>
    %c0_52 = arith.constant 0 : index
    %c1_53 = arith.constant 1 : index
    %c0_54 = arith.constant 0 : index
    %c0_55 = arith.constant 0 : index
    %151 = vector.load %arg3[%c0_52, %c1_53, %c0_54, %c0_55] : memref<1x64x8x128xf32, #tpu.memory_space<vmem>>, vector<1x1x8x128xf32>
    %152 = vector.shape_cast %151 : vector<1x1x8x128xf32> to vector<8x128xf32>
    %153 = arith.addf %152, %150 : vector<8x128xf32>
    %c0_56 = arith.constant 0 : index
    %c1_57 = arith.constant 1 : index
    %c0_58 = arith.constant 0 : index
    %c0_59 = arith.constant 0 : index
    %154 = vector.load %arg3[%c0_56, %c1_57, %c0_58, %c0_59] : memref<1x64x8x128xf32, #tpu.memory_space<vmem>>, vector<1x1x8x128xf32>
    %155 = vector.shape_cast %154 : vector<1x1x8x128xf32> to vector<8x128xf32>
    %156 = vector.shape_cast %153 : vector<8x128xf32> to vector<1x1x8x128xf32>
    tpu.vector_store %arg3[%c0_56, %c1_57, %c0_58, %c0_59], %156 {strides = array<i32>} : memref<1x64x8x128xf32, #tpu.memory_space<vmem>>, vector<1x1x8x128xf32>,
    %157 = arith.mulf %35, %104 : vector<8x128xf32>
    %c0_60 = arith.constant 0 : index
    %c2_61 = arith.constant 2 : index
    %c0_62 = arith.constant 0 : index
    %c0_63 = arith.constant 0 : index
    %158 = vector.load %arg3[%c0_60, %c2_61, %c0_62, %c0_63] : memref<1x64x8x128xf32, #tpu.memory_space<vmem>>, vector<1x1x8x128xf32>
    %159 = vector.shape_cast %158 : vector<1x1x8x128xf32> to vector<8x128xf32>
    %160 = arith.addf %159, %157 : vector<8x128xf32>
    %c0_64 = arith.constant 0 : index
    %c2_65 = arith.constant 2 : index
    %c0_66 = arith.constant 0 : index
    %c0_67 = arith.constant 0 : index
    %161 = vector.load %arg3[%c0_64, %c2_65, %c0_66, %c0_67] : memref<1x64x8x128xf32, #tpu.memory_space<vmem>>, vector<1x1x8x128xf32>
    %162 = vector.shape_cast %161 : vector<1x1x8x128xf32> to vector<8x128xf32>
    %163 = vector.shape_cast %160 : vector<8x128xf32> to vector<1x1x8x128xf32>
    tpu.vector_store %arg3[%c0_64, %c2_65, %c0_66, %c0_67], %163 {strides = array<i32>} : memref<1x64x8x128xf32, #tpu.memory_space<vmem>>, vector<1x1x8x128xf32>,
    %164 = arith.mulf %35, %142 : vector<8x128xf32>
    %c0_68 = arith.constant 0 : index
    %c3 = arith.constant 3 : index
    %c0_69 = arith.constant 0 : index
    %c0_70 = arith.constant 0 : index
    %165 = vector.load %arg3[%c0_68, %c3, %c0_69, %c0_70] : memref<1x64x8x128xf32, #tpu.memory_space<vmem>>, vector<1x1x8x128xf32>
    %166 = vector.shape_cast %165 : vector<1x1x8x128xf32> to vector<8x128xf32>
    %167 = arith.addf %166, %164 : vector<8x128xf32>
    %c0_71 = arith.constant 0 : index
    %c3_72 = arith.constant 3 : index
    %c0_73 = arith.constant 0 : index
    %c0_74 = arith.constant 0 : index
    %168 = vector.load %arg3[%c0_71, %c3_72, %c0_73, %c0_74] : memref<1x64x8x128xf32, #tpu.memory_space<vmem>>, vector<1x1x8x128xf32>
    %169 = vector.shape_cast %168 : vector<1x1x8x128xf32> to vector<8x128xf32>
    %170 = vector.shape_cast %167 : vector<8x128xf32> to vector<1x1x8x128xf32>
    tpu.vector_store %arg3[%c0_71, %c3_72, %c0_73, %c0_74], %170 {strides = array<i32>} : memref<1x64x8x128xf32, #tpu.memory_space<vmem>>, vector<1x1x8x128xf32>,
    %171 = arith.mulf %35, %76 : vector<8x128xf32>
    %c0_75 = arith.constant 0 : index
    %c4 = arith.constant 4 : index
    %c0_76 = arith.constant 0 : index
    %c0_77 = arith.constant 0 : index
    %172 = vector.load %arg3[%c0_75, %c4, %c0_76, %c0_77] : memref<1x64x8x128xf32, #tpu.memory_space<vmem>>, vector<1x1x8x128xf32>
    %173 = vector.shape_cast %172 : vector<1x1x8x128xf32> to vector<8x128xf32>
    %174 = arith.addf %173, %171 : vector<8x128xf32>
    %c0_78 = arith.constant 0 : index
    %c4_79 = arith.constant 4 : index
    %c0_80 = arith.constant 0 : index
    %c0_81 = arith.constant 0 : index
    %175 = vector.load %arg3[%c0_78, %c4_79, %c0_80, %c0_81] : memref<1x64x8x128xf32, #tpu.memory_space<vmem>>, vector<1x1x8x128xf32>
    %176 = vector.shape_cast %175 : vector<1x1x8x128xf32> to vector<8x128xf32>
    %177 = vector.shape_cast %174 : vector<8x128xf32> to vector<1x1x8x128xf32>
    tpu.vector_store %arg3[%c0_78, %c4_79, %c0_80, %c0_81], %177 {strides = array<i32>} : memref<1x64x8x128xf32, #tpu.memory_space<vmem>>, vector<1x1x8x128xf32>,
    %178 = arith.mulf %35, %70 : vector<8x128xf32>
    %c0_82 = arith.constant 0 : index
    %c5 = arith.constant 5 : index
    %c0_83 = arith.constant 0 : index
    %c0_84 = arith.constant 0 : index
    %179 = vector.load %arg3[%c0_82, %c5, %c0_83, %c0_84] : memref<1x64x8x128xf32, #tpu.memory_space<vmem>>, vector<1x1x8x128xf32>
    %180 = vector.shape_cast %179 : vector<1x1x8x128xf32> to vector<8x128xf32>
    %181 = arith.addf %180, %178 : vector<8x128xf32>
    %c0_85 = arith.constant 0 : index
    %c5_86 = arith.constant 5 : index
    %c0_87 = arith.constant 0 : index
    %c0_88 = arith.constant 0 : index
    %182 = vector.load %arg3[%c0_85, %c5_86, %c0_87, %c0_88] : memref<1x64x8x128xf32, #tpu.memory_space<vmem>>, vector<1x1x8x128xf32>
    %183 = vector.shape_cast %182 : vector<1x1x8x128xf32> to vector<8x128xf32>
    %184 = vector.shape_cast %181 : vector<8x128xf32> to vector<1x1x8x128xf32>
    tpu.vector_store %arg3[%c0_85, %c5_86, %c0_87, %c0_88], %184 {strides = array<i32>} : memref<1x64x8x128xf32, #tpu.memory_space<vmem>>, vector<1x1x8x128xf32>,
    %185 = arith.mulf %35, %95 : vector<8x128xf32>
    %c0_89 = arith.constant 0 : index
    %c6 = arith.constant 6 : index
    %c0_90 = arith.constant 0 : index
    %c0_91 = arith.constant 0 : index
    %186 = vector.load %arg3[%c0_89, %c6, %c0_90, %c0_91] : memref<1x64x8x128xf32, #tpu.memory_space<vmem>>, vector<1x1x8x128xf32>
    %187 = vector.shape_cast %186 : vector<1x1x8x128xf32> to vector<8x128xf32>
    %188 = arith.addf %187, %185 : vector<8x128xf32>
    %c0_92 = arith.constant 0 : index
    %c6_93 = arith.constant 6 : index
    %c0_94 = arith.constant 0 : index
    %c0_95 = arith.constant 0 : index
    %189 = vector.load %arg3[%c0_92, %c6_93, %c0_94, %c0_95] : memref<1x64x8x128xf32, #tpu.memory_space<vmem>>, vector<1x1x8x128xf32>
    %190 = vector.shape_cast %189 : vector<1x1x8x128xf32> to vector<8x128xf32>
    %191 = vector.shape_cast %188 : vector<8x128xf32> to vector<1x1x8x128xf32>
    tpu.vector_store %arg3[%c0_92, %c6_93, %c0_94, %c0_95], %191 {strides = array<i32>} : memref<1x64x8x128xf32, #tpu.memory_space<vmem>>, vector<1x1x8x128xf32>,
    %192 = arith.mulf %35, %133 : vector<8x128xf32>
    %c0_96 = arith.constant 0 : index
    %c7 = arith.constant 7 : index
    %c0_97 = arith.constant 0 : index
    %c0_98 = arith.constant 0 : index
    %193 = vector.load %arg3[%c0_96, %c7, %c0_97, %c0_98] : memref<1x64x8x128xf32, #tpu.memory_space<vmem>>, vector<1x1x8x128xf32>
    %194 = vector.shape_cast %193 : vector<1x1x8x128xf32> to vector<8x128xf32>
    %195 = arith.addf %194, %192 : vector<8x128xf32>
    %c0_99 = arith.constant 0 : index
    %c7_100 = arith.constant 7 : index
    %c0_101 = arith.constant 0 : index
    %c0_102 = arith.constant 0 : index
    %196 = vector.load %arg3[%c0_99, %c7_100, %c0_101, %c0_102] : memref<1x64x8x128xf32, #tpu.memory_space<vmem>>, vector<1x1x8x128xf32>
    %197 = vector.shape_cast %196 : vector<1x1x8x128xf32> to vector<8x128xf32>
    %198 = vector.shape_cast %195 : vector<8x128xf32> to vector<1x1x8x128xf32>
    tpu.vector_store %arg3[%c0_99, %c7_100, %c0_101, %c0_102], %198 {strides = array<i32>} : memref<1x64x8x128xf32, #tpu.memory_space<vmem>>, vector<1x1x8x128xf32>,
    %199 = arith.mulf %35, %101 : vector<8x128xf32>
    %c0_103 = arith.constant 0 : index
    %c8 = arith.constant 8 : index
    %c0_104 = arith.constant 0 : index
    %c0_105 = arith.constant 0 : index
    %200 = vector.load %arg3[%c0_103, %c8, %c0_104, %c0_105] : memref<1x64x8x128xf32, #tpu.memory_space<vmem>>, vector<1x1x8x128xf32>
    %201 = vector.shape_cast %200 : vector<1x1x8x128xf32> to vector<8x128xf32>
    %202 = arith.addf %201, %199 : vector<8x128xf32>
    %c0_106 = arith.constant 0 : index
    %c8_107 = arith.constant 8 : index
    %c0_108 = arith.constant 0 : index
    %c0_109 = arith.constant 0 : index
    %203 = vector.load %arg3[%c0_106, %c8_107, %c0_108, %c0_109] : memref<1x64x8x128xf32, #tpu.memory_space<vmem>>, vector<1x1x8x128xf32>
    %204 = vector.shape_cast %203 : vector<1x1x8x128xf32> to vector<8x128xf32>
    %205 = vector.shape_cast %202 : vector<8x128xf32> to vector<1x1x8x128xf32>
    tpu.vector_store %arg3[%c0_106, %c8_107, %c0_108, %c0_109], %205 {strides = array<i32>} : memref<1x64x8x128xf32, #tpu.memory_space<vmem>>, vector<1x1x8x128xf32>,
    %206 = arith.mulf %35, %92 : vector<8x128xf32>
    %c0_110 = arith.constant 0 : index
    %c9 = arith.constant 9 : index
    %c0_111 = arith.constant 0 : index
    %c0_112 = arith.constant 0 : index
    %207 = vector.load %arg3[%c0_110, %c9, %c0_111, %c0_112] : memref<1x64x8x128xf32, #tpu.memory_space<vmem>>, vector<1x1x8x128xf32>
    %208 = vector.shape_cast %207 : vector<1x1x8x128xf32> to vector<8x128xf32>
    %209 = arith.addf %208, %206 : vector<8x128xf32>
    %c0_113 = arith.constant 0 : index
    %c9_114 = arith.constant 9 : index
    %c0_115 = arith.constant 0 : index
    %c0_116 = arith.constant 0 : index
    %210 = vector.load %arg3[%c0_113, %c9_114, %c0_115, %c0_116] : memref<1x64x8x128xf32, #tpu.memory_space<vmem>>, vector<1x1x8x128xf32>
    %211 = vector.shape_cast %210 : vector<1x1x8x128xf32> to vector<8x128xf32>
    %212 = vector.shape_cast %209 : vector<8x128xf32> to vector<1x1x8x128xf32>
    tpu.vector_store %arg3[%c0_113, %c9_114, %c0_115, %c0_116], %212 {strides = array<i32>} : memref<1x64x8x128xf32, #tpu.memory_space<vmem>>, vector<1x1x8x128xf32>,
    %213 = arith.mulf %35, %86 : vector<8x128xf32>
    %c0_117 = arith.constant 0 : index
    %c10 = arith.constant 10 : index
    %c0_118 = arith.constant 0 : index
    %c0_119 = arith.constant 0 : index
    %214 = vector.load %arg3[%c0_117, %c10, %c0_118, %c0_119] : memref<1x64x8x128xf32, #tpu.memory_space<vmem>>, vector<1x1x8x128xf32>
    %215 = vector.shape_cast %214 : vector<1x1x8x128xf32> to vector<8x128xf32>
    %216 = arith.addf %215, %213 : vector<8x128xf32>
    %c0_120 = arith.constant 0 : index
    %c10_121 = arith.constant 10 : index
    %c0_122 = arith.constant 0 : index
    %c0_123 = arith.constant 0 : index
    %217 = vector.load %arg3[%c0_120, %c10_121, %c0_122, %c0_123] : memref<1x64x8x128xf32, #tpu.memory_space<vmem>>, vector<1x1x8x128xf32>
    %218 = vector.shape_cast %217 : vector<1x1x8x128xf32> to vector<8x128xf32>
    %219 = vector.shape_cast %216 : vector<8x128xf32> to vector<1x1x8x128xf32>
    tpu.vector_store %arg3[%c0_120, %c10_121, %c0_122, %c0_123], %219 {strides = array<i32>} : memref<1x64x8x128xf32, #tpu.memory_space<vmem>>, vector<1x1x8x128xf32>,
    %220 = arith.mulf %35, %124 : vector<8x128xf32>
    %c0_124 = arith.constant 0 : index
    %c11 = arith.constant 11 : index
    %c0_125 = arith.constant 0 : index
    %c0_126 = arith.constant 0 : index
    %221 = vector.load %arg3[%c0_124, %c11, %c0_125, %c0_126] : memref<1x64x8x128xf32, #tpu.memory_space<vmem>>, vector<1x1x8x128xf32>
    %222 = vector.shape_cast %221 : vector<1x1x8x128xf32> to vector<8x128xf32>
    %223 = arith.addf %222, %220 : vector<8x128xf32>
    %c0_127 = arith.constant 0 : index
    %c11_128 = arith.constant 11 : index
    %c0_129 = arith.constant 0 : index
    %c0_130 = arith.constant 0 : index
    %224 = vector.load %arg3[%c0_127, %c11_128, %c0_129, %c0_130] : memref<1x64x8x128xf32, #tpu.memory_space<vmem>>, vector<1x1x8x128xf32>
    %225 = vector.shape_cast %224 : vector<1x1x8x128xf32> to vector<8x128xf32>
    %226 = vector.shape_cast %223 : vector<8x128xf32> to vector<1x1x8x128xf32>
    tpu.vector_store %arg3[%c0_127, %c11_128, %c0_129, %c0_130], %226 {strides = array<i32>} : memref<1x64x8x128xf32, #tpu.memory_space<vmem>>, vector<1x1x8x128xf32>,
    %227 = arith.mulf %35, %139 : vector<8x128xf32>
    %c0_131 = arith.constant 0 : index
    %c12 = arith.constant 12 : index
    %c0_132 = arith.constant 0 : index
    %c0_133 = arith.constant 0 : index
    %228 = vector.load %arg3[%c0_131, %c12, %c0_132, %c0_133] : memref<1x64x8x128xf32, #tpu.memory_space<vmem>>, vector<1x1x8x128xf32>
    %229 = vector.shape_cast %228 : vector<1x1x8x128xf32> to vector<8x128xf32>
    %230 = arith.addf %229, %227 : vector<8x128xf32>
    %c0_134 = arith.constant 0 : index
    %c12_135 = arith.constant 12 : index
    %c0_136 = arith.constant 0 : index
    %c0_137 = arith.constant 0 : index
    %231 = vector.load %arg3[%c0_134, %c12_135, %c0_136, %c0_137] : memref<1x64x8x128xf32, #tpu.memory_space<vmem>>, vector<1x1x8x128xf32>
    %232 = vector.shape_cast %231 : vector<1x1x8x128xf32> to vector<8x128xf32>
    %233 = vector.shape_cast %230 : vector<8x128xf32> to vector<1x1x8x128xf32>
    tpu.vector_store %arg3[%c0_134, %c12_135, %c0_136, %c0_137], %233 {strides = array<i32>} : memref<1x64x8x128xf32, #tpu.memory_space<vmem>>, vector<1x1x8x128xf32>,
    %234 = arith.mulf %35, %130 : vector<8x128xf32>
    %c0_138 = arith.constant 0 : index
    %c13 = arith.constant 13 : index
    %c0_139 = arith.constant 0 : index
    %c0_140 = arith.constant 0 : index
    %235 = vector.load %arg3[%c0_138, %c13, %c0_139, %c0_140] : memref<1x64x8x128xf32, #tpu.memory_space<vmem>>, vector<1x1x8x128xf32>
    %236 = vector.shape_cast %235 : vector<1x1x8x128xf32> to vector<8x128xf32>
    %237 = arith.addf %236, %234 : vector<8x128xf32>
    %c0_141 = arith.constant 0 : index
    %c13_142 = arith.constant 13 : index
    %c0_143 = arith.constant 0 : index
    %c0_144 = arith.constant 0 : index
    %238 = vector.load %arg3[%c0_141, %c13_142, %c0_143, %c0_144] : memref<1x64x8x128xf32, #tpu.memory_space<vmem>>, vector<1x1x8x128xf32>
    %239 = vector.shape_cast %238 : vector<1x1x8x128xf32> to vector<8x128xf32>
    %240 = vector.shape_cast %237 : vector<8x128xf32> to vector<1x1x8x128xf32>
    tpu.vector_store %arg3[%c0_141, %c13_142, %c0_143, %c0_144], %240 {strides = array<i32>} : memref<1x64x8x128xf32, #tpu.memory_space<vmem>>, vector<1x1x8x128xf32>,
    %241 = arith.mulf %35, %121 : vector<8x128xf32>
    %c0_145 = arith.constant 0 : index
    %c14 = arith.constant 14 : index
    %c0_146 = arith.constant 0 : index
    %c0_147 = arith.constant 0 : index
    %242 = vector.load %arg3[%c0_145, %c14, %c0_146, %c0_147] : memref<1x64x8x128xf32, #tpu.memory_space<vmem>>, vector<1x1x8x128xf32>
    %243 = vector.shape_cast %242 : vector<1x1x8x128xf32> to vector<8x128xf32>
    %244 = arith.addf %243, %241 : vector<8x128xf32>
    %c0_148 = arith.constant 0 : index
    %c14_149 = arith.constant 14 : index
    %c0_150 = arith.constant 0 : index
    %c0_151 = arith.constant 0 : index
    %245 = vector.load %arg3[%c0_148, %c14_149, %c0_150, %c0_151] : memref<1x64x8x128xf32, #tpu.memory_space<vmem>>, vector<1x1x8x128xf32>
    %246 = vector.shape_cast %245 : vector<1x1x8x128xf32> to vector<8x128xf32>
    %247 = vector.shape_cast %244 : vector<8x128xf32> to vector<1x1x8x128xf32>
    tpu.vector_store %arg3[%c0_148, %c14_149, %c0_150, %c0_151], %247 {strides = array<i32>} : memref<1x64x8x128xf32, #tpu.memory_space<vmem>>, vector<1x1x8x128xf32>,
    %248 = arith.mulf %35, %111 : vector<8x128xf32>
    %c0_152 = arith.constant 0 : index
    %c15 = arith.constant 15 : index
    %c0_153 = arith.constant 0 : index
    %c0_154 = arith.constant 0 : index
    %249 = vector.load %arg3[%c0_152, %c15, %c0_153, %c0_154] : memref<1x64x8x128xf32, #tpu.memory_space<vmem>>, vector<1x1x8x128xf32>
    %250 = vector.shape_cast %249 : vector<1x1x8x128xf32> to vector<8x128xf32>
    %251 = arith.addf %250, %248 : vector<8x128xf32>
    %c0_155 = arith.constant 0 : index
    %c15_156 = arith.constant 15 : index
    %c0_157 = arith.constant 0 : index
    %c0_158 = arith.constant 0 : index
    %252 = vector.load %arg3[%c0_155, %c15_156, %c0_157, %c0_158] : memref<1x64x8x128xf32, #tpu.memory_space<vmem>>, vector<1x1x8x128xf32>
    %253 = vector.shape_cast %252 : vector<1x1x8x128xf32> to vector<8x128xf32>
    %254 = vector.shape_cast %251 : vector<8x128xf32> to vector<1x1x8x128xf32>
    tpu.vector_store %arg3[%c0_155, %c15_156, %c0_157, %c0_158], %254 {strides = array<i32>} : memref<1x64x8x128xf32, #tpu.memory_space<vmem>>, vector<1x1x8x128xf32>,
    %255 = arith.mulf %36, %67 : vector<8x128xf32>
    %c0_159 = arith.constant 0 : index
    %c16 = arith.constant 16 : index
    %c0_160 = arith.constant 0 : index
    %c0_161 = arith.constant 0 : index
    %256 = vector.load %arg3[%c0_159, %c16, %c0_160, %c0_161] : memref<1x64x8x128xf32, #tpu.memory_space<vmem>>, vector<1x1x8x128xf32>
    %257 = vector.shape_cast %256 : vector<1x1x8x128xf32> to vector<8x128xf32>
    %258 = arith.addf %257, %255 : vector<8x128xf32>
    %c0_162 = arith.constant 0 : index
    %c16_163 = arith.constant 16 : index
    %c0_164 = arith.constant 0 : index
    %c0_165 = arith.constant 0 : index
    %259 = vector.load %arg3[%c0_162, %c16_163, %c0_164, %c0_165] : memref<1x64x8x128xf32, #tpu.memory_space<vmem>>, vector<1x1x8x128xf32>
    %260 = vector.shape_cast %259 : vector<1x1x8x128xf32> to vector<8x128xf32>
    %261 = vector.shape_cast %258 : vector<8x128xf32> to vector<1x1x8x128xf32>
    tpu.vector_store %arg3[%c0_162, %c16_163, %c0_164, %c0_165], %261 {strides = array<i32>} : memref<1x64x8x128xf32, #tpu.memory_space<vmem>>, vector<1x1x8x128xf32>,
    %262 = arith.mulf %36, %79 : vector<8x128xf32>
    %c0_166 = arith.constant 0 : index
    %c17 = arith.constant 17 : index
    %c0_167 = arith.constant 0 : index
    %c0_168 = arith.constant 0 : index
    %263 = vector.load %arg3[%c0_166, %c17, %c0_167, %c0_168] : memref<1x64x8x128xf32, #tpu.memory_space<vmem>>, vector<1x1x8x128xf32>
    %264 = vector.shape_cast %263 : vector<1x1x8x128xf32> to vector<8x128xf32>
    %265 = arith.addf %264, %262 : vector<8x128xf32>
    %c0_169 = arith.constant 0 : index
    %c17_170 = arith.constant 17 : index
    %c0_171 = arith.constant 0 : index
    %c0_172 = arith.constant 0 : index
    %266 = vector.load %arg3[%c0_169, %c17_170, %c0_171, %c0_172] : memref<1x64x8x128xf32, #tpu.memory_space<vmem>>, vector<1x1x8x128xf32>
    %267 = vector.shape_cast %266 : vector<1x1x8x128xf32> to vector<8x128xf32>
    %268 = vector.shape_cast %265 : vector<8x128xf32> to vector<1x1x8x128xf32>
    tpu.vector_store %arg3[%c0_169, %c17_170, %c0_171, %c0_172], %268 {strides = array<i32>} : memref<1x64x8x128xf32, #tpu.memory_space<vmem>>, vector<1x1x8x128xf32>,
    %269 = arith.mulf %36, %104 : vector<8x128xf32>
    %c0_173 = arith.constant 0 : index
    %c18 = arith.constant 18 : index
    %c0_174 = arith.constant 0 : index
    %c0_175 = arith.constant 0 : index
    %270 = vector.load %arg3[%c0_173, %c18, %c0_174, %c0_175] : memref<1x64x8x128xf32, #tpu.memory_space<vmem>>, vector<1x1x8x128xf32>
    %271 = vector.shape_cast %270 : vector<1x1x8x128xf32> to vector<8x128xf32>
    %272 = arith.addf %271, %269 : vector<8x128xf32>
    %c0_176 = arith.constant 0 : index
    %c18_177 = arith.constant 18 : index
    %c0_178 = arith.constant 0 : index
    %c0_179 = arith.constant 0 : index
    %273 = vector.load %arg3[%c0_176, %c18_177, %c0_178, %c0_179] : memref<1x64x8x128xf32, #tpu.memory_space<vmem>>, vector<1x1x8x128xf32>
    %274 = vector.shape_cast %273 : vector<1x1x8x128xf32> to vector<8x128xf32>
    %275 = vector.shape_cast %272 : vector<8x128xf32> to vector<1x1x8x128xf32>
    tpu.vector_store %arg3[%c0_176, %c18_177, %c0_178, %c0_179], %275 {strides = array<i32>} : memref<1x64x8x128xf32, #tpu.memory_space<vmem>>, vector<1x1x8x128xf32>,
    %276 = arith.mulf %36, %142 : vector<8x128xf32>
    %c0_180 = arith.constant 0 : index
    %c19 = arith.constant 19 : index
    %c0_181 = arith.constant 0 : index
    %c0_182 = arith.constant 0 : index
    %277 = vector.load %arg3[%c0_180, %c19, %c0_181, %c0_182] : memref<1x64x8x128xf32, #tpu.memory_space<vmem>>, vector<1x1x8x128xf32>
    %278 = vector.shape_cast %277 : vector<1x1x8x128xf32> to vector<8x128xf32>
    %279 = arith.addf %278, %276 : vector<8x128xf32>
    %c0_183 = arith.constant 0 : index
    %c19_184 = arith.constant 19 : index
    %c0_185 = arith.constant 0 : index
    %c0_186 = arith.constant 0 : index
    %280 = vector.load %arg3[%c0_183, %c19_184, %c0_185, %c0_186] : memref<1x64x8x128xf32, #tpu.memory_space<vmem>>, vector<1x1x8x128xf32>
    %281 = vector.shape_cast %280 : vector<1x1x8x128xf32> to vector<8x128xf32>
    %282 = vector.shape_cast %279 : vector<8x128xf32> to vector<1x1x8x128xf32>
    tpu.vector_store %arg3[%c0_183, %c19_184, %c0_185, %c0_186], %282 {strides = array<i32>} : memref<1x64x8x128xf32, #tpu.memory_space<vmem>>, vector<1x1x8x128xf32>,
    %283 = arith.mulf %36, %76 : vector<8x128xf32>
    %c0_187 = arith.constant 0 : index
    %c20 = arith.constant 20 : index
    %c0_188 = arith.constant 0 : index
    %c0_189 = arith.constant 0 : index
    %284 = vector.load %arg3[%c0_187, %c20, %c0_188, %c0_189] : memref<1x64x8x128xf32, #tpu.memory_space<vmem>>, vector<1x1x8x128xf32>
    %285 = vector.shape_cast %284 : vector<1x1x8x128xf32> to vector<8x128xf32>
    %286 = arith.addf %285, %283 : vector<8x128xf32>
    %c0_190 = arith.constant 0 : index
    %c20_191 = arith.constant 20 : index
    %c0_192 = arith.constant 0 : index
    %c0_193 = arith.constant 0 : index
    %287 = vector.load %arg3[%c0_190, %c20_191, %c0_192, %c0_193] : memref<1x64x8x128xf32, #tpu.memory_space<vmem>>, vector<1x1x8x128xf32>
    %288 = vector.shape_cast %287 : vector<1x1x8x128xf32> to vector<8x128xf32>
    %289 = vector.shape_cast %286 : vector<8x128xf32> to vector<1x1x8x128xf32>
    tpu.vector_store %arg3[%c0_190, %c20_191, %c0_192, %c0_193], %289 {strides = array<i32>} : memref<1x64x8x128xf32, #tpu.memory_space<vmem>>, vector<1x1x8x128xf32>,
    %290 = arith.mulf %36, %70 : vector<8x128xf32>
    %c0_194 = arith.constant 0 : index
    %c21 = arith.constant 21 : index
    %c0_195 = arith.constant 0 : index
    %c0_196 = arith.constant 0 : index
    %291 = vector.load %arg3[%c0_194, %c21, %c0_195, %c0_196] : memref<1x64x8x128xf32, #tpu.memory_space<vmem>>, vector<1x1x8x128xf32>
    %292 = vector.shape_cast %291 : vector<1x1x8x128xf32> to vector<8x128xf32>
    %293 = arith.addf %292, %290 : vector<8x128xf32>
    %c0_197 = arith.constant 0 : index
    %c21_198 = arith.constant 21 : index
    %c0_199 = arith.constant 0 : index
    %c0_200 = arith.constant 0 : index
    %294 = vector.load %arg3[%c0_197, %c21_198, %c0_199, %c0_200] : memref<1x64x8x128xf32, #tpu.memory_space<vmem>>, vector<1x1x8x128xf32>
    %295 = vector.shape_cast %294 : vector<1x1x8x128xf32> to vector<8x128xf32>
    %296 = vector.shape_cast %293 : vector<8x128xf32> to vector<1x1x8x128xf32>
    tpu.vector_store %arg3[%c0_197, %c21_198, %c0_199, %c0_200], %296 {strides = array<i32>} : memref<1x64x8x128xf32, #tpu.memory_space<vmem>>, vector<1x1x8x128xf32>,
    %297 = arith.mulf %36, %95 : vector<8x128xf32>
    %c0_201 = arith.constant 0 : index
    %c22 = arith.constant 22 : index
    %c0_202 = arith.constant 0 : index
    %c0_203 = arith.constant 0 : index
    %298 = vector.load %arg3[%c0_201, %c22, %c0_202, %c0_203] : memref<1x64x8x128xf32, #tpu.memory_space<vmem>>, vector<1x1x8x128xf32>
    %299 = vector.shape_cast %298 : vector<1x1x8x128xf32> to vector<8x128xf32>
    %300 = arith.addf %299, %297 : vector<8x128xf32>
    %c0_204 = arith.constant 0 : index
    %c22_205 = arith.constant 22 : index
    %c0_206 = arith.constant 0 : index
    %c0_207 = arith.constant 0 : index
    %301 = vector.load %arg3[%c0_204, %c22_205, %c0_206, %c0_207] : memref<1x64x8x128xf32, #tpu.memory_space<vmem>>, vector<1x1x8x128xf32>
    %302 = vector.shape_cast %301 : vector<1x1x8x128xf32> to vector<8x128xf32>
    %303 = vector.shape_cast %300 : vector<8x128xf32> to vector<1x1x8x128xf32>
    tpu.vector_store %arg3[%c0_204, %c22_205, %c0_206, %c0_207], %303 {strides = array<i32>} : memref<1x64x8x128xf32, #tpu.memory_space<vmem>>, vector<1x1x8x128xf32>,
    %304 = arith.mulf %36, %133 : vector<8x128xf32>
    %c0_208 = arith.constant 0 : index
    %c23 = arith.constant 23 : index
    %c0_209 = arith.constant 0 : index
    %c0_210 = arith.constant 0 : index
    %305 = vector.load %arg3[%c0_208, %c23, %c0_209, %c0_210] : memref<1x64x8x128xf32, #tpu.memory_space<vmem>>, vector<1x1x8x128xf32>
    %306 = vector.shape_cast %305 : vector<1x1x8x128xf32> to vector<8x128xf32>
    %307 = arith.addf %306, %304 : vector<8x128xf32>
    %c0_211 = arith.constant 0 : index
    %c23_212 = arith.constant 23 : index
    %c0_213 = arith.constant 0 : index
    %c0_214 = arith.constant 0 : index
    %308 = vector.load %arg3[%c0_211, %c23_212, %c0_213, %c0_214] : memref<1x64x8x128xf32, #tpu.memory_space<vmem>>, vector<1x1x8x128xf32>
    %309 = vector.shape_cast %308 : vector<1x1x8x128xf32> to vector<8x128xf32>
    %310 = vector.shape_cast %307 : vector<8x128xf32> to vector<1x1x8x128xf32>
    tpu.vector_store %arg3[%c0_211, %c23_212, %c0_213, %c0_214], %310 {strides = array<i32>} : memref<1x64x8x128xf32, #tpu.memory_space<vmem>>, vector<1x1x8x128xf32>,
    %311 = arith.mulf %36, %101 : vector<8x128xf32>
    %c0_215 = arith.constant 0 : index
    %c24 = arith.constant 24 : index
    %c0_216 = arith.constant 0 : index
    %c0_217 = arith.constant 0 : index
    %312 = vector.load %arg3[%c0_215, %c24, %c0_216, %c0_217] : memref<1x64x8x128xf32, #tpu.memory_space<vmem>>, vector<1x1x8x128xf32>
    %313 = vector.shape_cast %312 : vector<1x1x8x128xf32> to vector<8x128xf32>
    %314 = arith.addf %313, %311 : vector<8x128xf32>
    %c0_218 = arith.constant 0 : index
    %c24_219 = arith.constant 24 : index
    %c0_220 = arith.constant 0 : index
    %c0_221 = arith.constant 0 : index
    %315 = vector.load %arg3[%c0_218, %c24_219, %c0_220, %c0_221] : memref<1x64x8x128xf32, #tpu.memory_space<vmem>>, vector<1x1x8x128xf32>
    %316 = vector.shape_cast %315 : vector<1x1x8x128xf32> to vector<8x128xf32>
    %317 = vector.shape_cast %314 : vector<8x128xf32> to vector<1x1x8x128xf32>
    tpu.vector_store %arg3[%c0_218, %c24_219, %c0_220, %c0_221], %317 {strides = array<i32>} : memref<1x64x8x128xf32, #tpu.memory_space<vmem>>, vector<1x1x8x128xf32>,
    %318 = arith.mulf %36, %92 : vector<8x128xf32>
    %c0_222 = arith.constant 0 : index
    %c25 = arith.constant 25 : index
    %c0_223 = arith.constant 0 : index
    %c0_224 = arith.constant 0 : index
    %319 = vector.load %arg3[%c0_222, %c25, %c0_223, %c0_224] : memref<1x64x8x128xf32, #tpu.memory_space<vmem>>, vector<1x1x8x128xf32>
    %320 = vector.shape_cast %319 : vector<1x1x8x128xf32> to vector<8x128xf32>
    %321 = arith.addf %320, %318 : vector<8x128xf32>
    %c0_225 = arith.constant 0 : index
    %c25_226 = arith.constant 25 : index
    %c0_227 = arith.constant 0 : index
    %c0_228 = arith.constant 0 : index
    %322 = vector.load %arg3[%c0_225, %c25_226, %c0_227, %c0_228] : memref<1x64x8x128xf32, #tpu.memory_space<vmem>>, vector<1x1x8x128xf32>
    %323 = vector.shape_cast %322 : vector<1x1x8x128xf32> to vector<8x128xf32>
    %324 = vector.shape_cast %321 : vector<8x128xf32> to vector<1x1x8x128xf32>
    tpu.vector_store %arg3[%c0_225, %c25_226, %c0_227, %c0_228], %324 {strides = array<i32>} : memref<1x64x8x128xf32, #tpu.memory_space<vmem>>, vector<1x1x8x128xf32>,
    %325 = arith.mulf %36, %86 : vector<8x128xf32>
    %c0_229 = arith.constant 0 : index
    %c26 = arith.constant 26 : index
    %c0_230 = arith.constant 0 : index
    %c0_231 = arith.constant 0 : index
    %326 = vector.load %arg3[%c0_229, %c26, %c0_230, %c0_231] : memref<1x64x8x128xf32, #tpu.memory_space<vmem>>, vector<1x1x8x128xf32>
    %327 = vector.shape_cast %326 : vector<1x1x8x128xf32> to vector<8x128xf32>
    %328 = arith.addf %327, %325 : vector<8x128xf32>
    %c0_232 = arith.constant 0 : index
    %c26_233 = arith.constant 26 : index
    %c0_234 = arith.constant 0 : index
    %c0_235 = arith.constant 0 : index
    %329 = vector.load %arg3[%c0_232, %c26_233, %c0_234, %c0_235] : memref<1x64x8x128xf32, #tpu.memory_space<vmem>>, vector<1x1x8x128xf32>
    %330 = vector.shape_cast %329 : vector<1x1x8x128xf32> to vector<8x128xf32>
    %331 = vector.shape_cast %328 : vector<8x128xf32> to vector<1x1x8x128xf32>
    tpu.vector_store %arg3[%c0_232, %c26_233, %c0_234, %c0_235], %331 {strides = array<i32>} : memref<1x64x8x128xf32, #tpu.memory_space<vmem>>, vector<1x1x8x128xf32>,
    %332 = arith.mulf %36, %124 : vector<8x128xf32>
    %c0_236 = arith.constant 0 : index
    %c27 = arith.constant 27 : index
    %c0_237 = arith.constant 0 : index
    %c0_238 = arith.constant 0 : index
    %333 = vector.load %arg3[%c0_236, %c27, %c0_237, %c0_238] : memref<1x64x8x128xf32, #tpu.memory_space<vmem>>, vector<1x1x8x128xf32>
    %334 = vector.shape_cast %333 : vector<1x1x8x128xf32> to vector<8x128xf32>
    %335 = arith.addf %334, %332 : vector<8x128xf32>
    %c0_239 = arith.constant 0 : index
    %c27_240 = arith.constant 27 : index
    %c0_241 = arith.constant 0 : index
    %c0_242 = arith.constant 0 : index
    %336 = vector.load %arg3[%c0_239, %c27_240, %c0_241, %c0_242] : memref<1x64x8x128xf32, #tpu.memory_space<vmem>>, vector<1x1x8x128xf32>
    %337 = vector.shape_cast %336 : vector<1x1x8x128xf32> to vector<8x128xf32>
    %338 = vector.shape_cast %335 : vector<8x128xf32> to vector<1x1x8x128xf32>
    tpu.vector_store %arg3[%c0_239, %c27_240, %c0_241, %c0_242], %338 {strides = array<i32>} : memref<1x64x8x128xf32, #tpu.memory_space<vmem>>, vector<1x1x8x128xf32>,
    %339 = arith.mulf %36, %139 : vector<8x128xf32>
    %c0_243 = arith.constant 0 : index
    %c28 = arith.constant 28 : index
    %c0_244 = arith.constant 0 : index
    %c0_245 = arith.constant 0 : index
    %340 = vector.load %arg3[%c0_243, %c28, %c0_244, %c0_245] : memref<1x64x8x128xf32, #tpu.memory_space<vmem>>, vector<1x1x8x128xf32>
    %341 = vector.shape_cast %340 : vector<1x1x8x128xf32> to vector<8x128xf32>
    %342 = arith.addf %341, %339 : vector<8x128xf32>
    %c0_246 = arith.constant 0 : index
    %c28_247 = arith.constant 28 : index
    %c0_248 = arith.constant 0 : index
    %c0_249 = arith.constant 0 : index
    %343 = vector.load %arg3[%c0_246, %c28_247, %c0_248, %c0_249] : memref<1x64x8x128xf32, #tpu.memory_space<vmem>>, vector<1x1x8x128xf32>
    %344 = vector.shape_cast %343 : vector<1x1x8x128xf32> to vector<8x128xf32>
    %345 = vector.shape_cast %342 : vector<8x128xf32> to vector<1x1x8x128xf32>
    tpu.vector_store %arg3[%c0_246, %c28_247, %c0_248, %c0_249], %345 {strides = array<i32>} : memref<1x64x8x128xf32, #tpu.memory_space<vmem>>, vector<1x1x8x128xf32>,
    %346 = arith.mulf %36, %130 : vector<8x128xf32>
    %c0_250 = arith.constant 0 : index
    %c29 = arith.constant 29 : index
    %c0_251 = arith.constant 0 : index
    %c0_252 = arith.constant 0 : index
    %347 = vector.load %arg3[%c0_250, %c29, %c0_251, %c0_252] : memref<1x64x8x128xf32, #tpu.memory_space<vmem>>, vector<1x1x8x128xf32>
    %348 = vector.shape_cast %347 : vector<1x1x8x128xf32> to vector<8x128xf32>
    %349 = arith.addf %348, %346 : vector<8x128xf32>
    %c0_253 = arith.constant 0 : index
    %c29_254 = arith.constant 29 : index
    %c0_255 = arith.constant 0 : index
    %c0_256 = arith.constant 0 : index
    %350 = vector.load %arg3[%c0_253, %c29_254, %c0_255, %c0_256] : memref<1x64x8x128xf32, #tpu.memory_space<vmem>>, vector<1x1x8x128xf32>
    %351 = vector.shape_cast %350 : vector<1x1x8x128xf32> to vector<8x128xf32>
    %352 = vector.shape_cast %349 : vector<8x128xf32> to vector<1x1x8x128xf32>
    tpu.vector_store %arg3[%c0_253, %c29_254, %c0_255, %c0_256], %352 {strides = array<i32>} : memref<1x64x8x128xf32, #tpu.memory_space<vmem>>, vector<1x1x8x128xf32>,
    %353 = arith.mulf %36, %121 : vector<8x128xf32>
    %c0_257 = arith.constant 0 : index
    %c30 = arith.constant 30 : index
    %c0_258 = arith.constant 0 : index
    %c0_259 = arith.constant 0 : index
    %354 = vector.load %arg3[%c0_257, %c30, %c0_258, %c0_259] : memref<1x64x8x128xf32, #tpu.memory_space<vmem>>, vector<1x1x8x128xf32>
    %355 = vector.shape_cast %354 : vector<1x1x8x128xf32> to vector<8x128xf32>
    %356 = arith.addf %355, %353 : vector<8x128xf32>
    %c0_260 = arith.constant 0 : index
    %c30_261 = arith.constant 30 : index
    %c0_262 = arith.constant 0 : index
    %c0_263 = arith.constant 0 : index
    %357 = vector.load %arg3[%c0_260, %c30_261, %c0_262, %c0_263] : memref<1x64x8x128xf32, #tpu.memory_space<vmem>>, vector<1x1x8x128xf32>
    %358 = vector.shape_cast %357 : vector<1x1x8x128xf32> to vector<8x128xf32>
    %359 = vector.shape_cast %356 : vector<8x128xf32> to vector<1x1x8x128xf32>
    tpu.vector_store %arg3[%c0_260, %c30_261, %c0_262, %c0_263], %359 {strides = array<i32>} : memref<1x64x8x128xf32, #tpu.memory_space<vmem>>, vector<1x1x8x128xf32>,
    %360 = arith.mulf %36, %111 : vector<8x128xf32>
    %c0_264 = arith.constant 0 : index
    %c31 = arith.constant 31 : index
    %c0_265 = arith.constant 0 : index
    %c0_266 = arith.constant 0 : index
    %361 = vector.load %arg3[%c0_264, %c31, %c0_265, %c0_266] : memref<1x64x8x128xf32, #tpu.memory_space<vmem>>, vector<1x1x8x128xf32>
    %362 = vector.shape_cast %361 : vector<1x1x8x128xf32> to vector<8x128xf32>
    %363 = arith.addf %362, %360 : vector<8x128xf32>
    %c0_267 = arith.constant 0 : index
    %c31_268 = arith.constant 31 : index
    %c0_269 = arith.constant 0 : index
    %c0_270 = arith.constant 0 : index
    %364 = vector.load %arg3[%c0_267, %c31_268, %c0_269, %c0_270] : memref<1x64x8x128xf32, #tpu.memory_space<vmem>>, vector<1x1x8x128xf32>
    %365 = vector.shape_cast %364 : vector<1x1x8x128xf32> to vector<8x128xf32>
    %366 = vector.shape_cast %363 : vector<8x128xf32> to vector<1x1x8x128xf32>
    tpu.vector_store %arg3[%c0_267, %c31_268, %c0_269, %c0_270], %366 {strides = array<i32>} : memref<1x64x8x128xf32, #tpu.memory_space<vmem>>, vector<1x1x8x128xf32>,
    %367 = arith.mulf %37, %67 : vector<8x128xf32>
    %c0_271 = arith.constant 0 : index
    %c32 = arith.constant 32 : index
    %c0_272 = arith.constant 0 : index
    %c0_273 = arith.constant 0 : index
    %368 = vector.load %arg3[%c0_271, %c32, %c0_272, %c0_273] : memref<1x64x8x128xf32, #tpu.memory_space<vmem>>, vector<1x1x8x128xf32>
    %369 = vector.shape_cast %368 : vector<1x1x8x128xf32> to vector<8x128xf32>
    %370 = arith.addf %369, %367 : vector<8x128xf32>
    %c0_274 = arith.constant 0 : index
    %c32_275 = arith.constant 32 : index
    %c0_276 = arith.constant 0 : index
    %c0_277 = arith.constant 0 : index
    %371 = vector.load %arg3[%c0_274, %c32_275, %c0_276, %c0_277] : memref<1x64x8x128xf32, #tpu.memory_space<vmem>>, vector<1x1x8x128xf32>
    %372 = vector.shape_cast %371 : vector<1x1x8x128xf32> to vector<8x128xf32>
    %373 = vector.shape_cast %370 : vector<8x128xf32> to vector<1x1x8x128xf32>
    tpu.vector_store %arg3[%c0_274, %c32_275, %c0_276, %c0_277], %373 {strides = array<i32>} : memref<1x64x8x128xf32, #tpu.memory_space<vmem>>, vector<1x1x8x128xf32>,
    %374 = arith.mulf %37, %79 : vector<8x128xf32>
    %c0_278 = arith.constant 0 : index
    %c33 = arith.constant 33 : index
    %c0_279 = arith.constant 0 : index
    %c0_280 = arith.constant 0 : index
    %375 = vector.load %arg3[%c0_278, %c33, %c0_279, %c0_280] : memref<1x64x8x128xf32, #tpu.memory_space<vmem>>, vector<1x1x8x128xf32>
    %376 = vector.shape_cast %375 : vector<1x1x8x128xf32> to vector<8x128xf32>
    %377 = arith.addf %376, %374 : vector<8x128xf32>
    %c0_281 = arith.constant 0 : index
    %c33_282 = arith.constant 33 : index
    %c0_283 = arith.constant 0 : index
    %c0_284 = arith.constant 0 : index
    %378 = vector.load %arg3[%c0_281, %c33_282, %c0_283, %c0_284] : memref<1x64x8x128xf32, #tpu.memory_space<vmem>>, vector<1x1x8x128xf32>
    %379 = vector.shape_cast %378 : vector<1x1x8x128xf32> to vector<8x128xf32>
    %380 = vector.shape_cast %377 : vector<8x128xf32> to vector<1x1x8x128xf32>
    tpu.vector_store %arg3[%c0_281, %c33_282, %c0_283, %c0_284], %380 {strides = array<i32>} : memref<1x64x8x128xf32, #tpu.memory_space<vmem>>, vector<1x1x8x128xf32>,
    %381 = arith.mulf %37, %104 : vector<8x128xf32>
    %c0_285 = arith.constant 0 : index
    %c34 = arith.constant 34 : index
    %c0_286 = arith.constant 0 : index
    %c0_287 = arith.constant 0 : index
    %382 = vector.load %arg3[%c0_285, %c34, %c0_286, %c0_287] : memref<1x64x8x128xf32, #tpu.memory_space<vmem>>, vector<1x1x8x128xf32>
    %383 = vector.shape_cast %382 : vector<1x1x8x128xf32> to vector<8x128xf32>
    %384 = arith.addf %383, %381 : vector<8x128xf32>
    %c0_288 = arith.constant 0 : index
    %c34_289 = arith.constant 34 : index
    %c0_290 = arith.constant 0 : index
    %c0_291 = arith.constant 0 : index
    %385 = vector.load %arg3[%c0_288, %c34_289, %c0_290, %c0_291] : memref<1x64x8x128xf32, #tpu.memory_space<vmem>>, vector<1x1x8x128xf32>
    %386 = vector.shape_cast %385 : vector<1x1x8x128xf32> to vector<8x128xf32>
    %387 = vector.shape_cast %384 : vector<8x128xf32> to vector<1x1x8x128xf32>
    tpu.vector_store %arg3[%c0_288, %c34_289, %c0_290, %c0_291], %387 {strides = array<i32>} : memref<1x64x8x128xf32, #tpu.memory_space<vmem>>, vector<1x1x8x128xf32>,
    %388 = arith.mulf %37, %142 : vector<8x128xf32>
    %c0_292 = arith.constant 0 : index
    %c35 = arith.constant 35 : index
    %c0_293 = arith.constant 0 : index
    %c0_294 = arith.constant 0 : index
    %389 = vector.load %arg3[%c0_292, %c35, %c0_293, %c0_294] : memref<1x64x8x128xf32, #tpu.memory_space<vmem>>, vector<1x1x8x128xf32>
    %390 = vector.shape_cast %389 : vector<1x1x8x128xf32> to vector<8x128xf32>
    %391 = arith.addf %390, %388 : vector<8x128xf32>
    %c0_295 = arith.constant 0 : index
    %c35_296 = arith.constant 35 : index
    %c0_297 = arith.constant 0 : index
    %c0_298 = arith.constant 0 : index
    %392 = vector.load %arg3[%c0_295, %c35_296, %c0_297, %c0_298] : memref<1x64x8x128xf32, #tpu.memory_space<vmem>>, vector<1x1x8x128xf32>
    %393 = vector.shape_cast %392 : vector<1x1x8x128xf32> to vector<8x128xf32>
    %394 = vector.shape_cast %391 : vector<8x128xf32> to vector<1x1x8x128xf32>
    tpu.vector_store %arg3[%c0_295, %c35_296, %c0_297, %c0_298], %394 {strides = array<i32>} : memref<1x64x8x128xf32, #tpu.memory_space<vmem>>, vector<1x1x8x128xf32>,
    %395 = arith.mulf %37, %76 : vector<8x128xf32>
    %c0_299 = arith.constant 0 : index
    %c36 = arith.constant 36 : index
    %c0_300 = arith.constant 0 : index
    %c0_301 = arith.constant 0 : index
    %396 = vector.load %arg3[%c0_299, %c36, %c0_300, %c0_301] : memref<1x64x8x128xf32, #tpu.memory_space<vmem>>, vector<1x1x8x128xf32>
    %397 = vector.shape_cast %396 : vector<1x1x8x128xf32> to vector<8x128xf32>
    %398 = arith.addf %397, %395 : vector<8x128xf32>
    %c0_302 = arith.constant 0 : index
    %c36_303 = arith.constant 36 : index
    %c0_304 = arith.constant 0 : index
    %c0_305 = arith.constant 0 : index
    %399 = vector.load %arg3[%c0_302, %c36_303, %c0_304, %c0_305] : memref<1x64x8x128xf32, #tpu.memory_space<vmem>>, vector<1x1x8x128xf32>
    %400 = vector.shape_cast %399 : vector<1x1x8x128xf32> to vector<8x128xf32>
    %401 = vector.shape_cast %398 : vector<8x128xf32> to vector<1x1x8x128xf32>
    tpu.vector_store %arg3[%c0_302, %c36_303, %c0_304, %c0_305], %401 {strides = array<i32>} : memref<1x64x8x128xf32, #tpu.memory_space<vmem>>, vector<1x1x8x128xf32>,
    %402 = arith.mulf %37, %70 : vector<8x128xf32>
    %c0_306 = arith.constant 0 : index
    %c37 = arith.constant 37 : index
    %c0_307 = arith.constant 0 : index
    %c0_308 = arith.constant 0 : index
    %403 = vector.load %arg3[%c0_306, %c37, %c0_307, %c0_308] : memref<1x64x8x128xf32, #tpu.memory_space<vmem>>, vector<1x1x8x128xf32>
    %404 = vector.shape_cast %403 : vector<1x1x8x128xf32> to vector<8x128xf32>
    %405 = arith.addf %404, %402 : vector<8x128xf32>
    %c0_309 = arith.constant 0 : index
    %c37_310 = arith.constant 37 : index
    %c0_311 = arith.constant 0 : index
    %c0_312 = arith.constant 0 : index
    %406 = vector.load %arg3[%c0_309, %c37_310, %c0_311, %c0_312] : memref<1x64x8x128xf32, #tpu.memory_space<vmem>>, vector<1x1x8x128xf32>
    %407 = vector.shape_cast %406 : vector<1x1x8x128xf32> to vector<8x128xf32>
    %408 = vector.shape_cast %405 : vector<8x128xf32> to vector<1x1x8x128xf32>
    tpu.vector_store %arg3[%c0_309, %c37_310, %c0_311, %c0_312], %408 {strides = array<i32>} : memref<1x64x8x128xf32, #tpu.memory_space<vmem>>, vector<1x1x8x128xf32>,
    %409 = arith.mulf %37, %95 : vector<8x128xf32>
    %c0_313 = arith.constant 0 : index
    %c38 = arith.constant 38 : index
    %c0_314 = arith.constant 0 : index
    %c0_315 = arith.constant 0 : index
    %410 = vector.load %arg3[%c0_313, %c38, %c0_314, %c0_315] : memref<1x64x8x128xf32, #tpu.memory_space<vmem>>, vector<1x1x8x128xf32>
    %411 = vector.shape_cast %410 : vector<1x1x8x128xf32> to vector<8x128xf32>
    %412 = arith.addf %411, %409 : vector<8x128xf32>
    %c0_316 = arith.constant 0 : index
    %c38_317 = arith.constant 38 : index
    %c0_318 = arith.constant 0 : index
    %c0_319 = arith.constant 0 : index
    %413 = vector.load %arg3[%c0_316, %c38_317, %c0_318, %c0_319] : memref<1x64x8x128xf32, #tpu.memory_space<vmem>>, vector<1x1x8x128xf32>
    %414 = vector.shape_cast %413 : vector<1x1x8x128xf32> to vector<8x128xf32>
    %415 = vector.shape_cast %412 : vector<8x128xf32> to vector<1x1x8x128xf32>
    tpu.vector_store %arg3[%c0_316, %c38_317, %c0_318, %c0_319], %415 {strides = array<i32>} : memref<1x64x8x128xf32, #tpu.memory_space<vmem>>, vector<1x1x8x128xf32>,
    %416 = arith.mulf %37, %133 : vector<8x128xf32>
    %c0_320 = arith.constant 0 : index
    %c39 = arith.constant 39 : index
    %c0_321 = arith.constant 0 : index
    %c0_322 = arith.constant 0 : index
    %417 = vector.load %arg3[%c0_320, %c39, %c0_321, %c0_322] : memref<1x64x8x128xf32, #tpu.memory_space<vmem>>, vector<1x1x8x128xf32>
    %418 = vector.shape_cast %417 : vector<1x1x8x128xf32> to vector<8x128xf32>
    %419 = arith.addf %418, %416 : vector<8x128xf32>
    %c0_323 = arith.constant 0 : index
    %c39_324 = arith.constant 39 : index
    %c0_325 = arith.constant 0 : index
    %c0_326 = arith.constant 0 : index
    %420 = vector.load %arg3[%c0_323, %c39_324, %c0_325, %c0_326] : memref<1x64x8x128xf32, #tpu.memory_space<vmem>>, vector<1x1x8x128xf32>
    %421 = vector.shape_cast %420 : vector<1x1x8x128xf32> to vector<8x128xf32>
    %422 = vector.shape_cast %419 : vector<8x128xf32> to vector<1x1x8x128xf32>
    tpu.vector_store %arg3[%c0_323, %c39_324, %c0_325, %c0_326], %422 {strides = array<i32>} : memref<1x64x8x128xf32, #tpu.memory_space<vmem>>, vector<1x1x8x128xf32>,
    %423 = arith.mulf %37, %101 : vector<8x128xf32>
    %c0_327 = arith.constant 0 : index
    %c40 = arith.constant 40 : index
    %c0_328 = arith.constant 0 : index
    %c0_329 = arith.constant 0 : index
    %424 = vector.load %arg3[%c0_327, %c40, %c0_328, %c0_329] : memref<1x64x8x128xf32, #tpu.memory_space<vmem>>, vector<1x1x8x128xf32>
    %425 = vector.shape_cast %424 : vector<1x1x8x128xf32> to vector<8x128xf32>
    %426 = arith.addf %425, %423 : vector<8x128xf32>
    %c0_330 = arith.constant 0 : index
    %c40_331 = arith.constant 40 : index
    %c0_332 = arith.constant 0 : index
    %c0_333 = arith.constant 0 : index
    %427 = vector.load %arg3[%c0_330, %c40_331, %c0_332, %c0_333] : memref<1x64x8x128xf32, #tpu.memory_space<vmem>>, vector<1x1x8x128xf32>
    %428 = vector.shape_cast %427 : vector<1x1x8x128xf32> to vector<8x128xf32>
    %429 = vector.shape_cast %426 : vector<8x128xf32> to vector<1x1x8x128xf32>
    tpu.vector_store %arg3[%c0_330, %c40_331, %c0_332, %c0_333], %429 {strides = array<i32>} : memref<1x64x8x128xf32, #tpu.memory_space<vmem>>, vector<1x1x8x128xf32>,
    %430 = arith.mulf %37, %92 : vector<8x128xf32>
    %c0_334 = arith.constant 0 : index
    %c41 = arith.constant 41 : index
    %c0_335 = arith.constant 0 : index
    %c0_336 = arith.constant 0 : index
    %431 = vector.load %arg3[%c0_334, %c41, %c0_335, %c0_336] : memref<1x64x8x128xf32, #tpu.memory_space<vmem>>, vector<1x1x8x128xf32>
    %432 = vector.shape_cast %431 : vector<1x1x8x128xf32> to vector<8x128xf32>
    %433 = arith.addf %432, %430 : vector<8x128xf32>
    %c0_337 = arith.constant 0 : index
    %c41_338 = arith.constant 41 : index
    %c0_339 = arith.constant 0 : index
    %c0_340 = arith.constant 0 : index
    %434 = vector.load %arg3[%c0_337, %c41_338, %c0_339, %c0_340] : memref<1x64x8x128xf32, #tpu.memory_space<vmem>>, vector<1x1x8x128xf32>
    %435 = vector.shape_cast %434 : vector<1x1x8x128xf32> to vector<8x128xf32>
    %436 = vector.shape_cast %433 : vector<8x128xf32> to vector<1x1x8x128xf32>
    tpu.vector_store %arg3[%c0_337, %c41_338, %c0_339, %c0_340], %436 {strides = array<i32>} : memref<1x64x8x128xf32, #tpu.memory_space<vmem>>, vector<1x1x8x128xf32>,
    %437 = arith.mulf %37, %86 : vector<8x128xf32>
    %c0_341 = arith.constant 0 : index
    %c42 = arith.constant 42 : index
    %c0_342 = arith.constant 0 : index
    %c0_343 = arith.constant 0 : index
    %438 = vector.load %arg3[%c0_341, %c42, %c0_342, %c0_343] : memref<1x64x8x128xf32, #tpu.memory_space<vmem>>, vector<1x1x8x128xf32>
    %439 = vector.shape_cast %438 : vector<1x1x8x128xf32> to vector<8x128xf32>
    %440 = arith.addf %439, %437 : vector<8x128xf32>
    %c0_344 = arith.constant 0 : index
    %c42_345 = arith.constant 42 : index
    %c0_346 = arith.constant 0 : index
    %c0_347 = arith.constant 0 : index
    %441 = vector.load %arg3[%c0_344, %c42_345, %c0_346, %c0_347] : memref<1x64x8x128xf32, #tpu.memory_space<vmem>>, vector<1x1x8x128xf32>
    %442 = vector.shape_cast %441 : vector<1x1x8x128xf32> to vector<8x128xf32>
    %443 = vector.shape_cast %440 : vector<8x128xf32> to vector<1x1x8x128xf32>
    tpu.vector_store %arg3[%c0_344, %c42_345, %c0_346, %c0_347], %443 {strides = array<i32>} : memref<1x64x8x128xf32, #tpu.memory_space<vmem>>, vector<1x1x8x128xf32>,
    %444 = arith.mulf %37, %124 : vector<8x128xf32>
    %c0_348 = arith.constant 0 : index
    %c43 = arith.constant 43 : index
    %c0_349 = arith.constant 0 : index
    %c0_350 = arith.constant 0 : index
    %445 = vector.load %arg3[%c0_348, %c43, %c0_349, %c0_350] : memref<1x64x8x128xf32, #tpu.memory_space<vmem>>, vector<1x1x8x128xf32>
    %446 = vector.shape_cast %445 : vector<1x1x8x128xf32> to vector<8x128xf32>
    %447 = arith.addf %446, %444 : vector<8x128xf32>
    %c0_351 = arith.constant 0 : index
    %c43_352 = arith.constant 43 : index
    %c0_353 = arith.constant 0 : index
    %c0_354 = arith.constant 0 : index
    %448 = vector.load %arg3[%c0_351, %c43_352, %c0_353, %c0_354] : memref<1x64x8x128xf32, #tpu.memory_space<vmem>>, vector<1x1x8x128xf32>
    %449 = vector.shape_cast %448 : vector<1x1x8x128xf32> to vector<8x128xf32>
    %450 = vector.shape_cast %447 : vector<8x128xf32> to vector<1x1x8x128xf32>
    tpu.vector_store %arg3[%c0_351, %c43_352, %c0_353, %c0_354], %450 {strides = array<i32>} : memref<1x64x8x128xf32, #tpu.memory_space<vmem>>, vector<1x1x8x128xf32>,
    %451 = arith.mulf %37, %139 : vector<8x128xf32>
    %c0_355 = arith.constant 0 : index
    %c44 = arith.constant 44 : index
    %c0_356 = arith.constant 0 : index
    %c0_357 = arith.constant 0 : index
    %452 = vector.load %arg3[%c0_355, %c44, %c0_356, %c0_357] : memref<1x64x8x128xf32, #tpu.memory_space<vmem>>, vector<1x1x8x128xf32>
    %453 = vector.shape_cast %452 : vector<1x1x8x128xf32> to vector<8x128xf32>
    %454 = arith.addf %453, %451 : vector<8x128xf32>
    %c0_358 = arith.constant 0 : index
    %c44_359 = arith.constant 44 : index
    %c0_360 = arith.constant 0 : index
    %c0_361 = arith.constant 0 : index
    %455 = vector.load %arg3[%c0_358, %c44_359, %c0_360, %c0_361] : memref<1x64x8x128xf32, #tpu.memory_space<vmem>>, vector<1x1x8x128xf32>
    %456 = vector.shape_cast %455 : vector<1x1x8x128xf32> to vector<8x128xf32>
    %457 = vector.shape_cast %454 : vector<8x128xf32> to vector<1x1x8x128xf32>
    tpu.vector_store %arg3[%c0_358, %c44_359, %c0_360, %c0_361], %457 {strides = array<i32>} : memref<1x64x8x128xf32, #tpu.memory_space<vmem>>, vector<1x1x8x128xf32>,
    %458 = arith.mulf %37, %130 : vector<8x128xf32>
    %c0_362 = arith.constant 0 : index
    %c45 = arith.constant 45 : index
    %c0_363 = arith.constant 0 : index
    %c0_364 = arith.constant 0 : index
    %459 = vector.load %arg3[%c0_362, %c45, %c0_363, %c0_364] : memref<1x64x8x128xf32, #tpu.memory_space<vmem>>, vector<1x1x8x128xf32>
    %460 = vector.shape_cast %459 : vector<1x1x8x128xf32> to vector<8x128xf32>
    %461 = arith.addf %460, %458 : vector<8x128xf32>
    %c0_365 = arith.constant 0 : index
    %c45_366 = arith.constant 45 : index
    %c0_367 = arith.constant 0 : index
    %c0_368 = arith.constant 0 : index
    %462 = vector.load %arg3[%c0_365, %c45_366, %c0_367, %c0_368] : memref<1x64x8x128xf32, #tpu.memory_space<vmem>>, vector<1x1x8x128xf32>
    %463 = vector.shape_cast %462 : vector<1x1x8x128xf32> to vector<8x128xf32>
    %464 = vector.shape_cast %461 : vector<8x128xf32> to vector<1x1x8x128xf32>
    tpu.vector_store %arg3[%c0_365, %c45_366, %c0_367, %c0_368], %464 {strides = array<i32>} : memref<1x64x8x128xf32, #tpu.memory_space<vmem>>, vector<1x1x8x128xf32>,
    %465 = arith.mulf %37, %121 : vector<8x128xf32>
    %c0_369 = arith.constant 0 : index
    %c46 = arith.constant 46 : index
    %c0_370 = arith.constant 0 : index
    %c0_371 = arith.constant 0 : index
    %466 = vector.load %arg3[%c0_369, %c46, %c0_370, %c0_371] : memref<1x64x8x128xf32, #tpu.memory_space<vmem>>, vector<1x1x8x128xf32>
    %467 = vector.shape_cast %466 : vector<1x1x8x128xf32> to vector<8x128xf32>
    %468 = arith.addf %467, %465 : vector<8x128xf32>
    %c0_372 = arith.constant 0 : index
    %c46_373 = arith.constant 46 : index
    %c0_374 = arith.constant 0 : index
    %c0_375 = arith.constant 0 : index
    %469 = vector.load %arg3[%c0_372, %c46_373, %c0_374, %c0_375] : memref<1x64x8x128xf32, #tpu.memory_space<vmem>>, vector<1x1x8x128xf32>
    %470 = vector.shape_cast %469 : vector<1x1x8x128xf32> to vector<8x128xf32>
    %471 = vector.shape_cast %468 : vector<8x128xf32> to vector<1x1x8x128xf32>
    tpu.vector_store %arg3[%c0_372, %c46_373, %c0_374, %c0_375], %471 {strides = array<i32>} : memref<1x64x8x128xf32, #tpu.memory_space<vmem>>, vector<1x1x8x128xf32>,
    %472 = arith.mulf %37, %111 : vector<8x128xf32>
    %c0_376 = arith.constant 0 : index
    %c47 = arith.constant 47 : index
    %c0_377 = arith.constant 0 : index
    %c0_378 = arith.constant 0 : index
    %473 = vector.load %arg3[%c0_376, %c47, %c0_377, %c0_378] : memref<1x64x8x128xf32, #tpu.memory_space<vmem>>, vector<1x1x8x128xf32>
    %474 = vector.shape_cast %473 : vector<1x1x8x128xf32> to vector<8x128xf32>
    %475 = arith.addf %474, %472 : vector<8x128xf32>
    %c0_379 = arith.constant 0 : index
    %c47_380 = arith.constant 47 : index
    %c0_381 = arith.constant 0 : index
    %c0_382 = arith.constant 0 : index
    %476 = vector.load %arg3[%c0_379, %c47_380, %c0_381, %c0_382] : memref<1x64x8x128xf32, #tpu.memory_space<vmem>>, vector<1x1x8x128xf32>
    %477 = vector.shape_cast %476 : vector<1x1x8x128xf32> to vector<8x128xf32>
    %478 = vector.shape_cast %475 : vector<8x128xf32> to vector<1x1x8x128xf32>
    tpu.vector_store %arg3[%c0_379, %c47_380, %c0_381, %c0_382], %478 {strides = array<i32>} : memref<1x64x8x128xf32, #tpu.memory_space<vmem>>, vector<1x1x8x128xf32>,
    %479 = arith.mulf %38, %67 : vector<8x128xf32>
    %c0_383 = arith.constant 0 : index
    %c48 = arith.constant 48 : index
    %c0_384 = arith.constant 0 : index
    %c0_385 = arith.constant 0 : index
    %480 = vector.load %arg3[%c0_383, %c48, %c0_384, %c0_385] : memref<1x64x8x128xf32, #tpu.memory_space<vmem>>, vector<1x1x8x128xf32>
    %481 = vector.shape_cast %480 : vector<1x1x8x128xf32> to vector<8x128xf32>
    %482 = arith.addf %481, %479 : vector<8x128xf32>
    %c0_386 = arith.constant 0 : index
    %c48_387 = arith.constant 48 : index
    %c0_388 = arith.constant 0 : index
    %c0_389 = arith.constant 0 : index
    %483 = vector.load %arg3[%c0_386, %c48_387, %c0_388, %c0_389] : memref<1x64x8x128xf32, #tpu.memory_space<vmem>>, vector<1x1x8x128xf32>
    %484 = vector.shape_cast %483 : vector<1x1x8x128xf32> to vector<8x128xf32>
    %485 = vector.shape_cast %482 : vector<8x128xf32> to vector<1x1x8x128xf32>
    tpu.vector_store %arg3[%c0_386, %c48_387, %c0_388, %c0_389], %485 {strides = array<i32>} : memref<1x64x8x128xf32, #tpu.memory_space<vmem>>, vector<1x1x8x128xf32>,
    %486 = arith.mulf %38, %79 : vector<8x128xf32>
    %c0_390 = arith.constant 0 : index
    %c49 = arith.constant 49 : index
    %c0_391 = arith.constant 0 : index
    %c0_392 = arith.constant 0 : index
    %487 = vector.load %arg3[%c0_390, %c49, %c0_391, %c0_392] : memref<1x64x8x128xf32, #tpu.memory_space<vmem>>, vector<1x1x8x128xf32>
    %488 = vector.shape_cast %487 : vector<1x1x8x128xf32> to vector<8x128xf32>
    %489 = arith.addf %488, %486 : vector<8x128xf32>
    %c0_393 = arith.constant 0 : index
    %c49_394 = arith.constant 49 : index
    %c0_395 = arith.constant 0 : index
    %c0_396 = arith.constant 0 : index
    %490 = vector.load %arg3[%c0_393, %c49_394, %c0_395, %c0_396] : memref<1x64x8x128xf32, #tpu.memory_space<vmem>>, vector<1x1x8x128xf32>
    %491 = vector.shape_cast %490 : vector<1x1x8x128xf32> to vector<8x128xf32>
    %492 = vector.shape_cast %489 : vector<8x128xf32> to vector<1x1x8x128xf32>
    tpu.vector_store %arg3[%c0_393, %c49_394, %c0_395, %c0_396], %492 {strides = array<i32>} : memref<1x64x8x128xf32, #tpu.memory_space<vmem>>, vector<1x1x8x128xf32>,
    %493 = arith.mulf %38, %104 : vector<8x128xf32>
    %c0_397 = arith.constant 0 : index
    %c50 = arith.constant 50 : index
    %c0_398 = arith.constant 0 : index
    %c0_399 = arith.constant 0 : index
    %494 = vector.load %arg3[%c0_397, %c50, %c0_398, %c0_399] : memref<1x64x8x128xf32, #tpu.memory_space<vmem>>, vector<1x1x8x128xf32>
    %495 = vector.shape_cast %494 : vector<1x1x8x128xf32> to vector<8x128xf32>
    %496 = arith.addf %495, %493 : vector<8x128xf32>
    %c0_400 = arith.constant 0 : index
    %c50_401 = arith.constant 50 : index
    %c0_402 = arith.constant 0 : index
    %c0_403 = arith.constant 0 : index
    %497 = vector.load %arg3[%c0_400, %c50_401, %c0_402, %c0_403] : memref<1x64x8x128xf32, #tpu.memory_space<vmem>>, vector<1x1x8x128xf32>
    %498 = vector.shape_cast %497 : vector<1x1x8x128xf32> to vector<8x128xf32>
    %499 = vector.shape_cast %496 : vector<8x128xf32> to vector<1x1x8x128xf32>
    tpu.vector_store %arg3[%c0_400, %c50_401, %c0_402, %c0_403], %499 {strides = array<i32>} : memref<1x64x8x128xf32, #tpu.memory_space<vmem>>, vector<1x1x8x128xf32>,
    %500 = arith.mulf %38, %142 : vector<8x128xf32>
    %c0_404 = arith.constant 0 : index
    %c51 = arith.constant 51 : index
    %c0_405 = arith.constant 0 : index
    %c0_406 = arith.constant 0 : index
    %501 = vector.load %arg3[%c0_404, %c51, %c0_405, %c0_406] : memref<1x64x8x128xf32, #tpu.memory_space<vmem>>, vector<1x1x8x128xf32>
    %502 = vector.shape_cast %501 : vector<1x1x8x128xf32> to vector<8x128xf32>
    %503 = arith.addf %502, %500 : vector<8x128xf32>
    %c0_407 = arith.constant 0 : index
    %c51_408 = arith.constant 51 : index
    %c0_409 = arith.constant 0 : index
    %c0_410 = arith.constant 0 : index
    %504 = vector.load %arg3[%c0_407, %c51_408, %c0_409, %c0_410] : memref<1x64x8x128xf32, #tpu.memory_space<vmem>>, vector<1x1x8x128xf32>
    %505 = vector.shape_cast %504 : vector<1x1x8x128xf32> to vector<8x128xf32>
    %506 = vector.shape_cast %503 : vector<8x128xf32> to vector<1x1x8x128xf32>
    tpu.vector_store %arg3[%c0_407, %c51_408, %c0_409, %c0_410], %506 {strides = array<i32>} : memref<1x64x8x128xf32, #tpu.memory_space<vmem>>, vector<1x1x8x128xf32>,
    %507 = arith.mulf %38, %76 : vector<8x128xf32>
    %c0_411 = arith.constant 0 : index
    %c52 = arith.constant 52 : index
    %c0_412 = arith.constant 0 : index
    %c0_413 = arith.constant 0 : index
    %508 = vector.load %arg3[%c0_411, %c52, %c0_412, %c0_413] : memref<1x64x8x128xf32, #tpu.memory_space<vmem>>, vector<1x1x8x128xf32>
    %509 = vector.shape_cast %508 : vector<1x1x8x128xf32> to vector<8x128xf32>
    %510 = arith.addf %509, %507 : vector<8x128xf32>
    %c0_414 = arith.constant 0 : index
    %c52_415 = arith.constant 52 : index
    %c0_416 = arith.constant 0 : index
    %c0_417 = arith.constant 0 : index
    %511 = vector.load %arg3[%c0_414, %c52_415, %c0_416, %c0_417] : memref<1x64x8x128xf32, #tpu.memory_space<vmem>>, vector<1x1x8x128xf32>
    %512 = vector.shape_cast %511 : vector<1x1x8x128xf32> to vector<8x128xf32>
    %513 = vector.shape_cast %510 : vector<8x128xf32> to vector<1x1x8x128xf32>
    tpu.vector_store %arg3[%c0_414, %c52_415, %c0_416, %c0_417], %513 {strides = array<i32>} : memref<1x64x8x128xf32, #tpu.memory_space<vmem>>, vector<1x1x8x128xf32>,
    %514 = arith.mulf %38, %70 : vector<8x128xf32>
    %c0_418 = arith.constant 0 : index
    %c53 = arith.constant 53 : index
    %c0_419 = arith.constant 0 : index
    %c0_420 = arith.constant 0 : index
    %515 = vector.load %arg3[%c0_418, %c53, %c0_419, %c0_420] : memref<1x64x8x128xf32, #tpu.memory_space<vmem>>, vector<1x1x8x128xf32>
    %516 = vector.shape_cast %515 : vector<1x1x8x128xf32> to vector<8x128xf32>
    %517 = arith.addf %516, %514 : vector<8x128xf32>
    %c0_421 = arith.constant 0 : index
    %c53_422 = arith.constant 53 : index
    %c0_423 = arith.constant 0 : index
    %c0_424 = arith.constant 0 : index
    %518 = vector.load %arg3[%c0_421, %c53_422, %c0_423, %c0_424] : memref<1x64x8x128xf32, #tpu.memory_space<vmem>>, vector<1x1x8x128xf32>
    %519 = vector.shape_cast %518 : vector<1x1x8x128xf32> to vector<8x128xf32>
    %520 = vector.shape_cast %517 : vector<8x128xf32> to vector<1x1x8x128xf32>
    tpu.vector_store %arg3[%c0_421, %c53_422, %c0_423, %c0_424], %520 {strides = array<i32>} : memref<1x64x8x128xf32, #tpu.memory_space<vmem>>, vector<1x1x8x128xf32>,
    %521 = arith.mulf %38, %95 : vector<8x128xf32>
    %c0_425 = arith.constant 0 : index
    %c54 = arith.constant 54 : index
    %c0_426 = arith.constant 0 : index
    %c0_427 = arith.constant 0 : index
    %522 = vector.load %arg3[%c0_425, %c54, %c0_426, %c0_427] : memref<1x64x8x128xf32, #tpu.memory_space<vmem>>, vector<1x1x8x128xf32>
    %523 = vector.shape_cast %522 : vector<1x1x8x128xf32> to vector<8x128xf32>
    %524 = arith.addf %523, %521 : vector<8x128xf32>
    %c0_428 = arith.constant 0 : index
    %c54_429 = arith.constant 54 : index
    %c0_430 = arith.constant 0 : index
    %c0_431 = arith.constant 0 : index
    %525 = vector.load %arg3[%c0_428, %c54_429, %c0_430, %c0_431] : memref<1x64x8x128xf32, #tpu.memory_space<vmem>>, vector<1x1x8x128xf32>
    %526 = vector.shape_cast %525 : vector<1x1x8x128xf32> to vector<8x128xf32>
    %527 = vector.shape_cast %524 : vector<8x128xf32> to vector<1x1x8x128xf32>
    tpu.vector_store %arg3[%c0_428, %c54_429, %c0_430, %c0_431], %527 {strides = array<i32>} : memref<1x64x8x128xf32, #tpu.memory_space<vmem>>, vector<1x1x8x128xf32>,
    %528 = arith.mulf %38, %133 : vector<8x128xf32>
    %c0_432 = arith.constant 0 : index
    %c55 = arith.constant 55 : index
    %c0_433 = arith.constant 0 : index
    %c0_434 = arith.constant 0 : index
    %529 = vector.load %arg3[%c0_432, %c55, %c0_433, %c0_434] : memref<1x64x8x128xf32, #tpu.memory_space<vmem>>, vector<1x1x8x128xf32>
    %530 = vector.shape_cast %529 : vector<1x1x8x128xf32> to vector<8x128xf32>
    %531 = arith.addf %530, %528 : vector<8x128xf32>
    %c0_435 = arith.constant 0 : index
    %c55_436 = arith.constant 55 : index
    %c0_437 = arith.constant 0 : index
    %c0_438 = arith.constant 0 : index
    %532 = vector.load %arg3[%c0_435, %c55_436, %c0_437, %c0_438] : memref<1x64x8x128xf32, #tpu.memory_space<vmem>>, vector<1x1x8x128xf32>
    %533 = vector.shape_cast %532 : vector<1x1x8x128xf32> to vector<8x128xf32>
    %534 = vector.shape_cast %531 : vector<8x128xf32> to vector<1x1x8x128xf32>
    tpu.vector_store %arg3[%c0_435, %c55_436, %c0_437, %c0_438], %534 {strides = array<i32>} : memref<1x64x8x128xf32, #tpu.memory_space<vmem>>, vector<1x1x8x128xf32>,
    %535 = arith.mulf %38, %101 : vector<8x128xf32>
    %c0_439 = arith.constant 0 : index
    %c56 = arith.constant 56 : index
    %c0_440 = arith.constant 0 : index
    %c0_441 = arith.constant 0 : index
    %536 = vector.load %arg3[%c0_439, %c56, %c0_440, %c0_441] : memref<1x64x8x128xf32, #tpu.memory_space<vmem>>, vector<1x1x8x128xf32>
    %537 = vector.shape_cast %536 : vector<1x1x8x128xf32> to vector<8x128xf32>
    %538 = arith.addf %537, %535 : vector<8x128xf32>
    %c0_442 = arith.constant 0 : index
    %c56_443 = arith.constant 56 : index
    %c0_444 = arith.constant 0 : index
    %c0_445 = arith.constant 0 : index
    %539 = vector.load %arg3[%c0_442, %c56_443, %c0_444, %c0_445] : memref<1x64x8x128xf32, #tpu.memory_space<vmem>>, vector<1x1x8x128xf32>
    %540 = vector.shape_cast %539 : vector<1x1x8x128xf32> to vector<8x128xf32>
    %541 = vector.shape_cast %538 : vector<8x128xf32> to vector<1x1x8x128xf32>
    tpu.vector_store %arg3[%c0_442, %c56_443, %c0_444, %c0_445], %541 {strides = array<i32>} : memref<1x64x8x128xf32, #tpu.memory_space<vmem>>, vector<1x1x8x128xf32>,
    %542 = arith.mulf %38, %92 : vector<8x128xf32>
    %c0_446 = arith.constant 0 : index
    %c57 = arith.constant 57 : index
    %c0_447 = arith.constant 0 : index
    %c0_448 = arith.constant 0 : index
    %543 = vector.load %arg3[%c0_446, %c57, %c0_447, %c0_448] : memref<1x64x8x128xf32, #tpu.memory_space<vmem>>, vector<1x1x8x128xf32>
    %544 = vector.shape_cast %543 : vector<1x1x8x128xf32> to vector<8x128xf32>
    %545 = arith.addf %544, %542 : vector<8x128xf32>
    %c0_449 = arith.constant 0 : index
    %c57_450 = arith.constant 57 : index
    %c0_451 = arith.constant 0 : index
    %c0_452 = arith.constant 0 : index
    %546 = vector.load %arg3[%c0_449, %c57_450, %c0_451, %c0_452] : memref<1x64x8x128xf32, #tpu.memory_space<vmem>>, vector<1x1x8x128xf32>
    %547 = vector.shape_cast %546 : vector<1x1x8x128xf32> to vector<8x128xf32>
    %548 = vector.shape_cast %545 : vector<8x128xf32> to vector<1x1x8x128xf32>
    tpu.vector_store %arg3[%c0_449, %c57_450, %c0_451, %c0_452], %548 {strides = array<i32>} : memref<1x64x8x128xf32, #tpu.memory_space<vmem>>, vector<1x1x8x128xf32>,
    %549 = arith.mulf %38, %86 : vector<8x128xf32>
    %c0_453 = arith.constant 0 : index
    %c58 = arith.constant 58 : index
    %c0_454 = arith.constant 0 : index
    %c0_455 = arith.constant 0 : index
    %550 = vector.load %arg3[%c0_453, %c58, %c0_454, %c0_455] : memref<1x64x8x128xf32, #tpu.memory_space<vmem>>, vector<1x1x8x128xf32>
    %551 = vector.shape_cast %550 : vector<1x1x8x128xf32> to vector<8x128xf32>
    %552 = arith.addf %551, %549 : vector<8x128xf32>
    %c0_456 = arith.constant 0 : index
    %c58_457 = arith.constant 58 : index
    %c0_458 = arith.constant 0 : index
    %c0_459 = arith.constant 0 : index
    %553 = vector.load %arg3[%c0_456, %c58_457, %c0_458, %c0_459] : memref<1x64x8x128xf32, #tpu.memory_space<vmem>>, vector<1x1x8x128xf32>
    %554 = vector.shape_cast %553 : vector<1x1x8x128xf32> to vector<8x128xf32>
    %555 = vector.shape_cast %552 : vector<8x128xf32> to vector<1x1x8x128xf32>
    tpu.vector_store %arg3[%c0_456, %c58_457, %c0_458, %c0_459], %555 {strides = array<i32>} : memref<1x64x8x128xf32, #tpu.memory_space<vmem>>, vector<1x1x8x128xf32>,
    %556 = arith.mulf %38, %124 : vector<8x128xf32>
    %c0_460 = arith.constant 0 : index
    %c59 = arith.constant 59 : index
    %c0_461 = arith.constant 0 : index
    %c0_462 = arith.constant 0 : index
    %557 = vector.load %arg3[%c0_460, %c59, %c0_461, %c0_462] : memref<1x64x8x128xf32, #tpu.memory_space<vmem>>, vector<1x1x8x128xf32>
    %558 = vector.shape_cast %557 : vector<1x1x8x128xf32> to vector<8x128xf32>
    %559 = arith.addf %558, %556 : vector<8x128xf32>
    %c0_463 = arith.constant 0 : index
    %c59_464 = arith.constant 59 : index
    %c0_465 = arith.constant 0 : index
    %c0_466 = arith.constant 0 : index
    %560 = vector.load %arg3[%c0_463, %c59_464, %c0_465, %c0_466] : memref<1x64x8x128xf32, #tpu.memory_space<vmem>>, vector<1x1x8x128xf32>
    %561 = vector.shape_cast %560 : vector<1x1x8x128xf32> to vector<8x128xf32>
    %562 = vector.shape_cast %559 : vector<8x128xf32> to vector<1x1x8x128xf32>
    tpu.vector_store %arg3[%c0_463, %c59_464, %c0_465, %c0_466], %562 {strides = array<i32>} : memref<1x64x8x128xf32, #tpu.memory_space<vmem>>, vector<1x1x8x128xf32>,
    %563 = arith.mulf %38, %139 : vector<8x128xf32>
    %c0_467 = arith.constant 0 : index
    %c60 = arith.constant 60 : index
    %c0_468 = arith.constant 0 : index
    %c0_469 = arith.constant 0 : index
    %564 = vector.load %arg3[%c0_467, %c60, %c0_468, %c0_469] : memref<1x64x8x128xf32, #tpu.memory_space<vmem>>, vector<1x1x8x128xf32>
    %565 = vector.shape_cast %564 : vector<1x1x8x128xf32> to vector<8x128xf32>
    %566 = arith.addf %565, %563 : vector<8x128xf32>
    %c0_470 = arith.constant 0 : index
    %c60_471 = arith.constant 60 : index
    %c0_472 = arith.constant 0 : index
    %c0_473 = arith.constant 0 : index
    %567 = vector.load %arg3[%c0_470, %c60_471, %c0_472, %c0_473] : memref<1x64x8x128xf32, #tpu.memory_space<vmem>>, vector<1x1x8x128xf32>
    %568 = vector.shape_cast %567 : vector<1x1x8x128xf32> to vector<8x128xf32>
    %569 = vector.shape_cast %566 : vector<8x128xf32> to vector<1x1x8x128xf32>
    tpu.vector_store %arg3[%c0_470, %c60_471, %c0_472, %c0_473], %569 {strides = array<i32>} : memref<1x64x8x128xf32, #tpu.memory_space<vmem>>, vector<1x1x8x128xf32>,
    %570 = arith.mulf %38, %130 : vector<8x128xf32>
    %c0_474 = arith.constant 0 : index
    %c61 = arith.constant 61 : index
    %c0_475 = arith.constant 0 : index
    %c0_476 = arith.constant 0 : index
    %571 = vector.load %arg3[%c0_474, %c61, %c0_475, %c0_476] : memref<1x64x8x128xf32, #tpu.memory_space<vmem>>, vector<1x1x8x128xf32>
    %572 = vector.shape_cast %571 : vector<1x1x8x128xf32> to vector<8x128xf32>
    %573 = arith.addf %572, %570 : vector<8x128xf32>
    %c0_477 = arith.constant 0 : index
    %c61_478 = arith.constant 61 : index
    %c0_479 = arith.constant 0 : index
    %c0_480 = arith.constant 0 : index
    %574 = vector.load %arg3[%c0_477, %c61_478, %c0_479, %c0_480] : memref<1x64x8x128xf32, #tpu.memory_space<vmem>>, vector<1x1x8x128xf32>
    %575 = vector.shape_cast %574 : vector<1x1x8x128xf32> to vector<8x128xf32>
    %576 = vector.shape_cast %573 : vector<8x128xf32> to vector<1x1x8x128xf32>
    tpu.vector_store %arg3[%c0_477, %c61_478, %c0_479, %c0_480], %576 {strides = array<i32>} : memref<1x64x8x128xf32, #tpu.memory_space<vmem>>, vector<1x1x8x128xf32>,
    %577 = arith.mulf %38, %121 : vector<8x128xf32>
    %c0_481 = arith.constant 0 : index
    %c62 = arith.constant 62 : index
    %c0_482 = arith.constant 0 : index
    %c0_483 = arith.constant 0 : index
    %578 = vector.load %arg3[%c0_481, %c62, %c0_482, %c0_483] : memref<1x64x8x128xf32, #tpu.memory_space<vmem>>, vector<1x1x8x128xf32>
    %579 = vector.shape_cast %578 : vector<1x1x8x128xf32> to vector<8x128xf32>
    %580 = arith.addf %579, %577 : vector<8x128xf32>
    %c0_484 = arith.constant 0 : index
    %c62_485 = arith.constant 62 : index
    %c0_486 = arith.constant 0 : index
    %c0_487 = arith.constant 0 : index
    %581 = vector.load %arg3[%c0_484, %c62_485, %c0_486, %c0_487] : memref<1x64x8x128xf32, #tpu.memory_space<vmem>>, vector<1x1x8x128xf32>
    %582 = vector.shape_cast %581 : vector<1x1x8x128xf32> to vector<8x128xf32>
    %583 = vector.shape_cast %580 : vector<8x128xf32> to vector<1x1x8x128xf32>
    tpu.vector_store %arg3[%c0_484, %c62_485, %c0_486, %c0_487], %583 {strides = array<i32>} : memref<1x64x8x128xf32, #tpu.memory_space<vmem>>, vector<1x1x8x128xf32>,
    %584 = arith.mulf %38, %111 : vector<8x128xf32>
    %c0_488 = arith.constant 0 : index
    %c63 = arith.constant 63 : index
    %c0_489 = arith.constant 0 : index
    %c0_490 = arith.constant 0 : index
    %585 = vector.load %arg3[%c0_488, %c63, %c0_489, %c0_490] : memref<1x64x8x128xf32, #tpu.memory_space<vmem>>, vector<1x1x8x128xf32>
    %586 = vector.shape_cast %585 : vector<1x1x8x128xf32> to vector<8x128xf32>
    %587 = arith.addf %586, %584 : vector<8x128xf32>
    %c0_491 = arith.constant 0 : index
    %c63_492 = arith.constant 63 : index
    %c0_493 = arith.constant 0 : index
    %c0_494 = arith.constant 0 : index
    %588 = vector.load %arg3[%c0_491, %c63_492, %c0_493, %c0_494] : memref<1x64x8x128xf32, #tpu.memory_space<vmem>>, vector<1x1x8x128xf32>
    %589 = vector.shape_cast %588 : vector<1x1x8x128xf32> to vector<8x128xf32>
    %590 = vector.shape_cast %587 : vector<8x128xf32> to vector<1x1x8x128xf32>
    tpu.vector_store %arg3[%c0_491, %c63_492, %c0_493, %c0_494], %590 {strides = array<i32>} : memref<1x64x8x128xf32, #tpu.memory_space<vmem>>, vector<1x1x8x128xf32>,
    return
  }
  func.func @transform_0(%arg0: i32, %arg1: i32) -> (i32, i32, i32) {
    %c1_i32 = arith.constant 1 : i32
    %0 = arith.muli %arg0, %c1_i32 : i32
    %1 = arith.addi %0, %arg1 : i32
    %c0_i32 = arith.constant 0 : i32
    %c0_i32_0 = arith.constant 0 : i32
    %c0_i32_1 = arith.constant 0 : i32
    return %c0_i32, %1, %c0_i32_0 : i32, i32, i32
  }
  func.func @transform_1(%arg0: i32, %arg1: i32) -> (i32, i32, i32, i32) {
    %c0_i32 = arith.constant 0 : i32
    %c0_i32_0 = arith.constant 0 : i32
    %c0_i32_1 = arith.constant 0 : i32
    %c0_i32_2 = arith.constant 0 : i32
    return %arg0, %c0_i32, %c0_i32_0, %c0_i32_1 : i32, i32, i32, i32
  }
}

</mosaic_0001>

<bundles_post_ra>
// kernel: tpu_custom_call.1
= control target key start
LH: loop header
LB: loop body
LE: loop exit
PB: predicated region body
PF: predicated region fallthrough
CT: control target
= control target key end

     0   :  { %6 = vsyncpa [#allocation3], 0  ;;  %s735_s0 = inlined_call_operand.hbm [shape: f32[3,8,128], index: 0, kind: input, shape index: {}]   ;;  %s736_s1 = inlined_call_operand.hbm [shape: f32[1,64,8,128], index: 1, kind: output, shape index: {}]  }
   0x1   :  { %7 = vsyncpa [#allocation4], 0  ;;  %s15_s8 = sshll.u32 %s735_s0, 4  ;;  %s570_s9 = smov [#allocation2]   ;;  %s16_s8 = int_to_ptr.hbm [resolvable:$true] %s15_s8 }
   0x2   :  { %s17_s10 = sshll.u32 %s570_s9, 4  ;;  %s571_s11 = smov 128   ;;  %s18_s10 = int_to_ptr.vmem [resolvable:$true] %s17_s10 }
   0x3   :  { %s572_s12 = smov 8  }
   0x4   :  { %23 = dma.hbm_to_vmem [thread:$0]  %s16_s8, 384, %s18_s10, [#allocation3], %s571_s11, %s571_s11, %s572_s12  }
   0x5   :  { %566 = dma.done.wait [#allocation3], 384  }
   0x6   :  { %567 = vsyncadd [#allocation3], 4294966912  ;;  %v97_v0 = vld [vmem:[#allocation2] sm:$0xff]  ;;  %v100_v1 = vld [vmem:[#allocation2 + $0x8] sm:$0xff]  ;;  %s573_s0 = smov [#allocation5]   ;;  %s496_s16 = sshll.u32 %s736_s1, 4  ;;  %s497_s16 = int_to_ptr.hbm [resolvable:$true] %s496_s16 }
   0x7   :  { %v103_v2 = vld [vmem:[#allocation2 + $0x10] sm:$0xff]  ;;  %v98_v3 = vmul.f32 0.5, %v97_v0  ;;  %v101_v4 = vmul.f32 0.5, %v100_v1  ;;  %s494_s13 = sshll.u32 %s573_s0, 4  ;;  %s495_s13 = int_to_ptr.vmem [resolvable:$true] %s494_s13 }
   0x8   :  { %v590_v5 = vmul.f32 0.5, %v103_v2 }
   0x9   :  { %v105_v6 = vmul.f32 %v98_v3, %v98_v3  ;;  %v106_v7 = vmul.f32 %v101_v4, %v101_v4  ;;  %v137_v11 = vmul.f32 0.0, %v98_v3  ;;  %v135_v12 = vmul.f32 0.0, %v101_v4 }
   0xa   :  { %v108_v8 = vmul.f32 %v590_v5, %v590_v5  ;;  %v154_v38 = vmul.f32 3.0, %v590_v5  ;;  %v169_v39 = vmul.f32 15.0, %v590_v5 }
   0xb   :  { %v107_v9 = vadd.f32 %v106_v7, %v105_v6  ;;  %v598_v15 = vadd.f32 %v137_v11, %v101_v4  ;;  %v600_v16 = vsub.f32 %v98_v3, %v135_v12 }
   0xc   :  { %v164_v32 = vmul.f32 7.5, %v108_v8  ;;  %v155_v44 = vmul.f32 0.57735026, %v154_v38  ;;  %v170_v45 = vmul.f32 0.12909944, %v169_v39  ;;  %v152_v46 = vmul.f32 1.5, %v108_v8 }
   0xd   :  { %v594_v10 = vadd.f32 %v108_v8, %v107_v9  ;;  %v142_v19 = vmul.f32 %v600_v16, %v101_v4  ;;  %v143_v20 = vmul.f32 %v598_v15, %v98_v3  ;;  %v139_v21 = vmul.f32 %v600_v16, %v98_v3 }
   0xe   :  { %v140_v22 = vmul.f32 %v598_v15, %v101_v4  ;;  %v151_v52 = vmul.f32 %v108_v8, %v590_v5  ;;  %v621_v56 = vmul.f32 %v155_v44, %v598_v15  ;;  %v628_v60 = vmul.f32 %v155_v44, %v600_v16 }
   0xf   :  { %514 = vrsqrt.f32 %v594_v10  ;;  %v125_v24 = vmul.f32 -0.5, %v594_v10  ;;  %vm117_vm0 = vcmp.eq.f32.partialorder %v594_v10, inf  ;;  %v120_v26 = vand.u32 2147483648, %v594_v10 }
  0x10   :  { %v144_v27 = vadd.f32 %v143_v20, %v142_v19  ;;  %v141_v28 = vsub.f32 %v139_v21, %v140_v22  ;;  %vm119_vm1 = vcmp.eq.f32.partialorder %v594_v10, 0.0  ;;  %v161_v31 = vmul.f32 -1.5, %v594_v10 }
  0x11   :  { %v126_v30 = vmul.f32 1.442695, %v125_v24  ;;  %v630_v61 = vadd.f32 %v152_v46, %v125_v24  ;;  %v160_v0 = vmul.f32 2.5, %v151_v52 }
  0x12   :  { %v148_v35 = vmul.f32 %v141_v28, %v101_v4  ;;  %v149_v36 = vmul.f32 %v144_v27, %v98_v3  ;;  %v165_v40 = vadd.f32 %v164_v32, %v161_v31  ;;  %v145_v50 = vmul.f32 %v141_v28, %v98_v3 }
  0x13   :  { %516 = vpow2.f32 %v126_v30  ;;  %v146_v51 = vmul.f32 %v144_v27, %v101_v4  ;;  %v616_v53 = vmul.f32 0.8660254, %v144_v27  ;;  %v623_v58 = vmul.f32 %v170_v45, %v144_v27 }
  0x14   :  { %v150_v42 = vadd.f32 %v149_v36, %v148_v35  ;;  %v166_v47 = vmul.f32 0.4082483, %v165_v40  ;;  %v625_v59 = vmul.f32 0.8660254, %v141_v28  ;;  %v162_v8 = vmul.f32 %v161_v31, %v590_v5 }
  0x15   :  { %v515_v13 = vpop.eup %514  ;;  %v147_v63 = vsub.f32 %v145_v50, %v146_v51 }
  0x16   :  { %v111_v14 = vmul.f32 %v515_v13, %v594_v10  ;;  %v618_v54 = vmul.f32 0.7905694, %v150_v42  ;;  %v633_v62 = vmul.f32 %v166_v47, %v598_v15  ;;  %v654_v20 = vadd.f32 %v162_v8, %v160_v0 }
  0x17   :  { %v644_v12 = vmul.f32 0.7905694, %v147_v63 }
  0x18   :  { %v112_v17 = vmul.f32 %v515_v13, %v111_v14  ;;  %v647_v14 = vmul.f32 %v170_v45, %v141_v28 }
  0x19   :  { %v517_v48 = vpop.eup %516 }
  0x1a   :  { %v113_v18 = vmul.f32 0.5, %v112_v17 }
  0x1c   :  { %v114_v23 = vsub.f32 1.5, %v113_v18  ;;  %v651_v18 = vmul.f32 %v166_v47, %v600_v16 }
  0x1e   :  { %v115_v25 = vmul.f32 %v515_v13, %v114_v23 }
  0x20   :  { %v116_v29 = vmul.f32 %v115_v25, %v594_v10 }
  0x22   :  { %v118_v33 = vsel %vm117_vm0, %v594_v10, %v116_v29 }
  0x23   :  { %v121_v34 = vsel %vm119_vm1, %v120_v26, %v118_v33 }
  0x24   :  { %v122_v37 = vmul.f32 2.0, %v121_v34 }
  0x26   :  { %v123_v41 = vmul.f32 0.16666667, %v122_v37  ;;  %vm128_vm2 = vcmp.lt.f32.partialorder %v122_v37, 6.0 }
  0x28   :  { %v124_v43 = vsub.f32 1.0, %v123_v41 }
  0x2a   :  { %v129_v49 = vmul.f32 %v124_v43, %v124_v43 }
  0x2c   :  { %v130_v55 = vsel %vm128_vm2, %v129_v49, 0.0 }
  0x2d   :  { %v131_v57 = vmul.f32 %v517_v48, %v130_v55 }
  0x2f   :  { %v178_v1 = vmul.f32 %v598_v15, %v131_v57  ;;  %v183_v2 = vmul.f32 %v616_v53, %v131_v57  ;;  %v188_v3 = vmul.f32 %v618_v54, %v131_v57  ;;  %v193_v4 = vmul.f32 %v600_v16, %v131_v57  ;;  %177 = vst [vmem:[#allocation5] sm:$0xff] %v131_v57 }
  0x30   :  { %v198_v6 = vmul.f32 %v131_v57, %v590_v5  ;;  %v203_v7 = vmul.f32 %v621_v56, %v131_v57  ;;  %v208_v9 = vmul.f32 %v623_v58, %v131_v57  ;;  %v213_v11 = vmul.f32 %v625_v59, %v131_v57 }
  0x31   :  { %182 = vst [vmem:[#allocation5 + $0x8] sm:$0xff] %v178_v1  ;;  %v218_v13 = vmul.f32 %v628_v60, %v131_v57  ;;  %v223_v17 = vmul.f32 %v630_v61, %v131_v57  ;;  %v228_v19 = vmul.f32 %v633_v62, %v131_v57  ;;  %v233_v21 = vmul.f32 %v644_v12, %v131_v57 }
  0x32   :  { %187 = vst [vmem:[#allocation5 + $0x10] sm:$0xff] %v183_v2  ;;  %v238_v22 = vmul.f32 %v647_v14, %v131_v57  ;;  %v243_v23 = vmul.f32 %v651_v18, %v131_v57  ;;  %v248_v24 = vmul.f32 %v654_v20, %v131_v57  ;;  %v132_v25 = vmul.f32 %v131_v57, %v594_v10 }
  0x33   :  { %192 = vst [vmem:[#allocation5 + $0x18] sm:$0xff] %v188_v3 }
  0x34   :  { %197 = vst [vmem:[#allocation5 + $0x20] sm:$0xff] %v193_v4  ;;  %v257_v26 = vmul.f32 %v598_v15, %v132_v25  ;;  %v262_v27 = vmul.f32 %v616_v53, %v132_v25  ;;  %v267_v28 = vmul.f32 %v618_v54, %v132_v25  ;;  %v272_v29 = vmul.f32 %v600_v16, %v132_v25 }
  0x35   :  { %202 = vst [vmem:[#allocation5 + $0x28] sm:$0xff] %v198_v6  ;;  %v277_v30 = vmul.f32 %v132_v25, %v590_v5  ;;  %v282_v31 = vmul.f32 %v621_v56, %v132_v25  ;;  %v287_v32 = vmul.f32 %v623_v58, %v132_v25  ;;  %v133_v33 = vmul.f32 %v132_v25, %v594_v10 }
  0x36   :  { %207 = vst [vmem:[#allocation5 + $0x30] sm:$0xff] %v203_v7  ;;  %v292_v34 = vmul.f32 %v625_v59, %v132_v25  ;;  %v297_v35 = vmul.f32 %v628_v60, %v132_v25  ;;  %v302_v36 = vmul.f32 %v630_v61, %v132_v25  ;;  %v307_v37 = vmul.f32 %v633_v62, %v132_v25 }
  0x37   :  { %212 = vst [vmem:[#allocation5 + $0x38] sm:$0xff] %v208_v9  ;;  %v674_v38 = vmul.f32 %v133_v33, %v594_v10  ;;  %v312_v39 = vmul.f32 %v644_v12, %v132_v25  ;;  %v317_v40 = vmul.f32 %v647_v14, %v132_v25  ;;  %v322_v41 = vmul.f32 %v651_v18, %v132_v25 }
  0x38   :  { %217 = vst [vmem:[#allocation5 + $0x40] sm:$0xff] %v213_v11  ;;  %v327_v43 = vmul.f32 %v654_v20, %v132_v25  ;;  %v336_v10 = vmul.f32 %v598_v15, %v133_v33  ;;  %v341_v44 = vmul.f32 %v616_v53, %v133_v33  ;;  %v346_v46 = vmul.f32 %v618_v54, %v133_v33 }
  0x39   :  { %222 = vst [vmem:[#allocation5 + $0x48] sm:$0xff] %v218_v13  ;;  %v435_v42 = vmul.f32 %v674_v38, %v590_v5  ;;  %v686_v45 = vmul.f32 %v654_v20, %v674_v38  ;;  %v351_v47 = vmul.f32 %v600_v16, %v133_v33  ;;  %v356_v48 = vmul.f32 %v133_v33, %v590_v5 }
  0x3a   :  { %227 = vst [vmem:[#allocation5 + $0x50] sm:$0xff] %v223_v17  ;;  %v361_v49 = vmul.f32 %v621_v56, %v133_v33  ;;  %v366_v50 = vmul.f32 %v623_v58, %v133_v33  ;;  %v371_v51 = vmul.f32 %v625_v59, %v133_v33  ;;  %v376_v52 = vmul.f32 %v628_v60, %v133_v33 }
  0x3b   :  { %232 = vst [vmem:[#allocation5 + $0x58] sm:$0xff] %v228_v19  ;;  %v381_v55 = vmul.f32 %v630_v61, %v133_v33  ;;  %v386_v57 = vmul.f32 %v633_v62, %v133_v33  ;;  %v391_v5 = vmul.f32 %v644_v12, %v133_v33  ;;  %v396_v63 = vmul.f32 %v647_v14, %v133_v33 }
  0x3c   :  { %237 = vst [vmem:[#allocation5 + $0x60] sm:$0xff] %v233_v21  ;;  %v401_v0 = vmul.f32 %v651_v18, %v133_v33  ;;  %v406_v1 = vmul.f32 %v654_v20, %v133_v33  ;;  %v415_v2 = vmul.f32 %v598_v15, %v674_v38  ;;  %v420_v3 = vmul.f32 %v616_v53, %v674_v38 }
  0x3d   :  { %242 = vst [vmem:[#allocation5 + $0x68] sm:$0xff] %v238_v22  ;;  %v425_v4 = vmul.f32 %v618_v54, %v674_v38  ;;  %v430_v6 = vmul.f32 %v600_v16, %v674_v38  ;;  %v440_v7 = vmul.f32 %v621_v56, %v674_v38  ;;  %v445_v15 = vmul.f32 %v623_v58, %v674_v38 }
  0x3e   :  { %247 = vst [vmem:[#allocation5 + $0x70] sm:$0xff] %v243_v23  ;;  %v450_v53 = vmul.f32 %v625_v59, %v674_v38  ;;  %v455_v54 = vmul.f32 %v628_v60, %v674_v38  ;;  %v460_v16 = vmul.f32 %v630_v61, %v674_v38  ;;  %v465_v56 = vmul.f32 %v633_v62, %v674_v38 }
  0x3f   :  { %252 = vst [vmem:[#allocation5 + $0x78] sm:$0xff] %v248_v24  ;;  %v470_v58 = vmul.f32 %v644_v12, %v674_v38  ;;  %v475_v59 = vmul.f32 %v647_v14, %v674_v38  ;;  %v480_v60 = vmul.f32 %v651_v18, %v674_v38 }
  0x40   :  { %256 = vst [vmem:[#allocation5 + $0x80] sm:$0xff] %v132_v25 }
  0x41   :  { %261 = vst [vmem:[#allocation5 + $0x88] sm:$0xff] %v257_v26 }
  0x42   :  { %266 = vst [vmem:[#allocation5 + $0x90] sm:$0xff] %v262_v27 }
  0x43   :  { %271 = vst [vmem:[#allocation5 + $0x98] sm:$0xff] %v267_v28 }
  0x44   :  { %276 = vst [vmem:[#allocation5 + $0xa0] sm:$0xff] %v272_v29 }
  0x45   :  { %281 = vst [vmem:[#allocation5 + $0xa8] sm:$0xff] %v277_v30 }
  0x46   :  { %286 = vst [vmem:[#allocation5 + $0xb0] sm:$0xff] %v282_v31 }
  0x47   :  { %291 = vst [vmem:[#allocation5 + $0xb8] sm:$0xff] %v287_v32 }
  0x48   :  { %296 = vst [vmem:[#allocation5 + $0xc0] sm:$0xff] %v292_v34 }
  0x49   :  { %301 = vst [vmem:[#allocation5 + $0xc8] sm:$0xff] %v297_v35 }
  0x4a   :  { %306 = vst [vmem:[#allocation5 + $0xd0] sm:$0xff] %v302_v36 }
  0x4b   :  { %311 = vst [vmem:[#allocation5 + $0xd8] sm:$0xff] %v307_v37 }
  0x4c   :  { %316 = vst [vmem:[#allocation5 + $0xe0] sm:$0xff] %v312_v39 }
  0x4d   :  { %321 = vst [vmem:[#allocation5 + $0xe8] sm:$0xff] %v317_v40 }
  0x4e   :  { %326 = vst [vmem:[#allocation5 + $0xf0] sm:$0xff] %v322_v41 }
  0x4f   :  { %331 = vst [vmem:[#allocation5 + $0xf8] sm:$0xff] %v327_v43 }
  0x50   :  { %335 = vst [vmem:[#allocation5 + $0x100] sm:$0xff] %v133_v33 }
  0x51   :  { %340 = vst [vmem:[#allocation5 + $0x108] sm:$0xff] %v336_v10 }
  0x52   :  { %345 = vst [vmem:[#allocation5 + $0x110] sm:$0xff] %v341_v44 }
  0x53   :  { %350 = vst [vmem:[#allocation5 + $0x118] sm:$0xff] %v346_v46 }
  0x54   :  { %355 = vst [vmem:[#allocation5 + $0x120] sm:$0xff] %v351_v47 }
  0x55   :  { %360 = vst [vmem:[#allocation5 + $0x128] sm:$0xff] %v356_v48 }
  0x56   :  { %365 = vst [vmem:[#allocation5 + $0x130] sm:$0xff] %v361_v49 }
  0x57   :  { %370 = vst [vmem:[#allocation5 + $0x138] sm:$0xff] %v366_v50 }
  0x58   :  { %375 = vst [vmem:[#allocation5 + $0x140] sm:$0xff] %v371_v51 }
  0x59   :  { %380 = vst [vmem:[#allocation5 + $0x148] sm:$0xff] %v376_v52 }
  0x5a   :  { %385 = vst [vmem:[#allocation5 + $0x150] sm:$0xff] %v381_v55 }
  0x5b   :  { %390 = vst [vmem:[#allocation5 + $0x158] sm:$0xff] %v386_v57 }
  0x5c   :  { %395 = vst [vmem:[#allocation5 + $0x160] sm:$0xff] %v391_v5 }
  0x5d   :  { %400 = vst [vmem:[#allocation5 + $0x168] sm:$0xff] %v396_v63 }
  0x5e   :  { %405 = vst [vmem:[#allocation5 + $0x170] sm:$0xff] %v401_v0 }
  0x5f   :  { %410 = vst [vmem:[#allocation5 + $0x178] sm:$0xff] %v406_v1 }
  0x60   :  { %414 = vst [vmem:[#allocation5 + $0x180] sm:$0xff] %v674_v38 }
  0x61   :  { %419 = vst [vmem:[#allocation5 + $0x188] sm:$0xff] %v415_v2 }
  0x62   :  { %424 = vst [vmem:[#allocation5 + $0x190] sm:$0xff] %v420_v3 }
  0x63   :  { %429 = vst [vmem:[#allocation5 + $0x198] sm:$0xff] %v425_v4 }
  0x64   :  { %434 = vst [vmem:[#allocation5 + $0x1a0] sm:$0xff] %v430_v6 }
  0x65   :  { %439 = vst [vmem:[#allocation5 + $0x1a8] sm:$0xff] %v435_v42 }
  0x66   :  { %444 = vst [vmem:[#allocation5 + $0x1b0] sm:$0xff] %v440_v7 }
  0x67   :  { %449 = vst [vmem:[#allocation5 + $0x1b8] sm:$0xff] %v445_v15 }
  0x68   :  { %454 = vst [vmem:[#allocation5 + $0x1c0] sm:$0xff] %v450_v53 }
  0x69   :  { %459 = vst [vmem:[#allocation5 + $0x1c8] sm:$0xff] %v455_v54 }
  0x6a   :  { %464 = vst [vmem:[#allocation5 + $0x1d0] sm:$0xff] %v460_v16 }
  0x6b   :  { %469 = vst [vmem:[#allocation5 + $0x1d8] sm:$0xff] %v465_v56 }
  0x6c   :  { %474 = vst [vmem:[#allocation5 + $0x1e0] sm:$0xff] %v470_v58 }
  0x6d   :  { %479 = vst [vmem:[#allocation5 + $0x1e8] sm:$0xff] %v475_v59 }
  0x6e   :  { %484 = vst [vmem:[#allocation5 + $0x1f0] sm:$0xff] %v480_v60 }
  0x6f   :  { %489 = vst [vmem:[#allocation5 + $0x1f8] sm:$0xff] %v686_v45 }
  0x70   :  { %502 = dma.vmem_to_hbm [thread:$0]  %s495_s13, 8192, %s497_s16, [#allocation4], %s571_s11, %s571_s11, %s572_s12  }
  0x71   :  { %568 = dma.done.wait [#allocation4], 8192  }
  0x72   :  { %569 = vsyncadd [#allocation4], 4294959104 }
  0x73   :  { %507 = vsyncpa [#allocation3], 1 }
  0x74   :  { %508 = vsyncpa [#allocation4], 1 }

</bundles_post_ra>
